<compile_context>
chip_gen: v6e
topology: v6e:2x2x1
jax: 0.10.0
libtpu: 0.0.40
codegen_flags: <defaults>
</compile_context>

<pallas_src>
import functools

import jax
import jax.numpy as jnp
from jax.experimental import pallas as pl
from jax.experimental.pallas import tpu as pltpu

_LANES = 128


def _conv2d_kernel(x_ref, w_ref, b_ref, o_ref, pad_ref, *,
                   BN, C, KH, KW, H, W, OH, NG):
    """Lane-packed direct convolution for a block of BN images (VPU + XLU only).

    x_ref:   (BN, C, H, W)     VMEM  input images
    w_ref:   (C*KH*KW, NG*W)   VMEM  weight rows: lane oc*W+j holds w[oc,c,kh,kw]
    b_ref:   (1, NG*W)         VMEM  bias row:    lane oc*W+j holds bias[oc]
    o_ref:   (BN, OH, NG*W)    VMEM  lane-packed output
    pad_ref: (H, NG*W) f32     VMEM  scratch: one channel plane, zero-padded lanes
    """
    L = NG * W

    # Zero the scratch once; lanes [W:L) stay zero for the whole invocation so
    # the per-channel store below only has to fill lanes [0:W).
    pad_ref[...] = jnp.zeros((H, L), jnp.float32)

    bias_row = b_ref[0, :]                                    # (L,)

    for n in range(BN):                                       # static loop (BN tiny)
        # One lane-packed f32 accumulator per image: (H, L) = 2 vregs,
        # seeded with the bias so it is added exactly once.
        acc = jnp.broadcast_to(bias_row, (H, L))

        for c in range(C):
            # One plane load per channel (not 27 misaligned tap slices).
            pad_ref[:, 0:W] = x_ref[n, c].astype(jnp.float32)
            plane = pad_ref[...]                              # (H, L), zeros >= W

            # Replicate the plane into all NG lane groups with log2(NG) XLU
            # rolls + adds (copies can't overlap: lanes >= W start as zero).
            rep = plane
            shift = W
            while shift < L:
                rep = rep + pltpu.roll(rep, shift, axis=1)
                shift *= 2

            # 9 (kh, kw) taps: XLU rolls for the shift, one lane-packed VPU
            # FMA per tap that covers ALL output channels at once.  Garbage
            # from roll wrap-around only lands in rows >= OH / lanes >= OW of
            # each group, which are dropped at store / unpack time.
            for kw in range(KW):
                pkw = rep if kw == 0 else pltpu.roll(rep, L - kw, axis=1)
                for kh in range(KH):
                    tap = pkw if kh == 0 else pltpu.roll(pkw, H - kh, axis=0)
                    t = (c * KH + kh) * KW + kw
                    acc = acc + tap * w_ref[t, :]

        # Lane-dense store: (OH, 128) rows, no lane masking.
        o_ref[n, :, :] = acc[:OH, :].astype(o_ref.dtype)


def conv2d_pallas(x, weight, bias, *, batch_block=None):
    """nn.Conv2d(3, 6, kernel_size=3, stride=1, padding=0) forward pass.

    batch_block=None processes the whole batch in a single grid step (best on
    single-TC v5e/v6e at small N).  On v7x with N >= 2, pass batch_block=N//2
    so the 'parallel' batch grid lands on both TensorCores.
    """
    N, C, H, W = x.shape
    OC, _, KH, KW = weight.shape
    OH, OW = H - KH + 1, W - KW + 1

    if _LANES % W != 0:
        # TODO(synk): OW tiling for widths that don't divide the 128-lane vreg.
        raise NotImplementedError("W must divide 128 for the lane-packed path")
    NG = _LANES // W                       # lane groups (group g = output chan g)
    assert OC <= NG, "too many output channels for one lane-packed vreg row"
    assert NG & (NG - 1) == 0, "lane-group count must be a power of two"
    L = NG * W
    T = C * KH * KW

    BN = N if batch_block is None else batch_block
    assert N % BN == 0
    num_blocks = N // BN

    # Lane-packed weight rows / bias row (tiny; fused into the jitted wrapper).
    w_t = jnp.transpose(weight, (1, 2, 3, 0)).reshape(T, OC).astype(jnp.float32)
    w_rows = jnp.repeat(jnp.pad(w_t, ((0, 0), (0, NG - OC))), W, axis=1)       # (T, L)
    b_row = jnp.repeat(jnp.pad(bias.astype(jnp.float32), (0, NG - OC)), W)[None, :]  # (1, L)

    kernel = functools.partial(_conv2d_kernel, BN=BN, C=C, KH=KH, KW=KW,
                               H=H, W=W, OH=OH, NG=NG)

    flops = 2 * N * OC * OH * OW * C * KH * KW
    bytes_accessed = (x.size * x.dtype.itemsize + w_rows.size * 4
                      + b_row.size * 4 + N * OH * L * x.dtype.itemsize)

    out_packed = pl.pallas_call(
        kernel,
        out_shape=jax.ShapeDtypeStruct((N, OH, L), x.dtype),
        grid=(num_blocks,),
        in_specs=[
            pl.BlockSpec((BN, C, H, W), lambda i: (i, 0, 0, 0)),
            pl.BlockSpec((T, L), lambda i: (0, 0)),
            pl.BlockSpec((1, L), lambda i: (0, 0)),
        ],
        out_specs=pl.BlockSpec((BN, OH, L), lambda i: (i, 0, 0)),
        scratch_shapes=[pltpu.VMEM((H, L), jnp.float32)],
        compiler_params=pltpu.CompilerParams(
            dimension_semantics=("parallel",) if num_blocks > 1 else ("arbitrary",)),
        cost_estimate=pl.CostEstimate(flops=flops, transcendentals=0,
                                      bytes_accessed=bytes_accessed),
    )(x, w_rows, b_row)

    # Unpack lane groups -> NCHW (~10 KB; fuses with the kernel under jit).
    out = out_packed.reshape(N, OH, NG, W)[:, :, :OC, :OW]
    return jnp.transpose(out, (0, 2, 1, 3))


if __name__ == "__main__":
    key = jax.random.PRNGKey(0)
    k_x, k_w, k_b = jax.random.split(key, 3)

    # Module shapes: Conv2d(in_channels=3, out_channels=6, kernel_size=3).
    N, C, H, W = 2, 3, 16, 16
    OC, KH, KW = 6, 3, 3

    x = jax.random.normal(k_x, (N, C, H, W), dtype=jnp.float32)

    # Deterministic PyTorch-style init: U(-1/sqrt(fan_in), 1/sqrt(fan_in)).
    fan_in = C * KH * KW
    bound = 1.0 / (fan_in ** 0.5)
    weight = jax.random.uniform(k_w, (OC, C, KH, KW), jnp.float32,
                                minval=-bound, maxval=bound)
    bias = jax.random.uniform(k_b, (OC,), jnp.float32,
                              minval=-bound, maxval=bound)

    conv = jax.jit(conv2d_pallas)
    out = jax.block_until_ready(conv(x, weight, bias))

    # Reference check against XLA's conv (same semantics as nn.Conv2d).
    ref = jax.lax.conv_general_dilated(
        x, weight, window_strides=(1, 1), padding="VALID",
        dimension_numbers=("NCHW", "OIHW", "NCHW")) + bias.reshape(1, OC, 1, 1)
    ref = jax.block_until_ready(ref)

    assert out.shape == (N, OC, H - KH + 1, W - KW + 1), out.shape
    assert jnp.allclose(out, ref, atol=1e-4, rtol=1e-4), "mismatch vs reference"

    print("KERNEL_OK")
</pallas_src>

<mosaic_0001>
module attributes {stable_mosaic.version = 11 : i64} {
  func.func @_conv2d_kernel(%arg0: i32, %arg1: memref<2x3x16x16xf32, #tpu.memory_space<vmem>>, %arg2: memref<27x128xf32, #tpu.memory_space<vmem>>, %arg3: memref<1x128xf32, #tpu.memory_space<vmem>>, %arg4: memref<2x14x128xf32, #tpu.memory_space<vmem>>, %arg5: memref<16x128xf32, #tpu.memory_space<vmem>>) attributes {dimension_semantics = [#tpu.dimension_semantics<arbitrary>], iteration_bounds = array<i64: 1>, scalar_prefetch = 0 : i64, scratch_operands = 1 : i64, tpu.core_type = #tpu.core_type<tc>, window_params = [{transform_indices = @transform_0, window_bounds = array<i64: 2, 3, 16, 16>}, {pipeline_mode = #tpu.pipeline_mode<synchronous>, transform_indices = @transform_1, window_bounds = array<i64: 27, 128>}, {pipeline_mode = #tpu.pipeline_mode<synchronous>, transform_indices = @transform_2, window_bounds = array<i64: 1, 128>}, {transform_indices = @transform_3, window_bounds = array<i64: 2, 14, 128>}]} {
    %cst = arith.constant 0.000000e+00 : f32
    %0 = vector.broadcast %cst : f32 to vector<16x128xf32>
    %c0 = arith.constant 0 : index
    %c0_0 = arith.constant 0 : index
    %1 = vector.load %arg5[%c0, %c0_0] : memref<16x128xf32, #tpu.memory_space<vmem>>, vector<16x128xf32>
    tpu.vector_store %arg5[%c0, %c0_0], %0 {strides = array<i32>} : memref<16x128xf32, #tpu.memory_space<vmem>>, vector<16x128xf32>,
    %c0_1 = arith.constant 0 : index
    %c0_2 = arith.constant 0 : index
    %2 = vector.load %arg3[%c0_1, %c0_2] : memref<1x128xf32, #tpu.memory_space<vmem>>, vector<1x128xf32>
    %3 = vector.shape_cast %2 : vector<1x128xf32> to vector<128xf32>
    %4 = vector.shape_cast %3 : vector<128xf32> to vector<1x128xf32>
    %5 = vector.broadcast %4 : vector<1x128xf32> to vector<16x128xf32>
    %c0_3 = arith.constant 0 : index
    %c0_4 = arith.constant 0 : index
    %c0_5 = arith.constant 0 : index
    %c0_6 = arith.constant 0 : index
    %6 = vector.load %arg1[%c0_3, %c0_4, %c0_5, %c0_6] : memref<2x3x16x16xf32, #tpu.memory_space<vmem>>, vector<1x1x16x16xf32>
    %7 = vector.shape_cast %6 : vector<1x1x16x16xf32> to vector<16x16xf32>
    %c0_7 = arith.constant 0 : index
    %c0_8 = arith.constant 0 : index
    %8 = vector.load %arg5[%c0_7, %c0_8] : memref<16x128xf32, #tpu.memory_space<vmem>>, vector<16x16xf32>
    tpu.vector_store %arg5[%c0_7, %c0_8], %7 {strides = array<i32>} : memref<16x128xf32, #tpu.memory_space<vmem>>, vector<16x16xf32>,
    %c0_9 = arith.constant 0 : index
    %c0_10 = arith.constant 0 : index
    %9 = vector.load %arg5[%c0_9, %c0_10] : memref<16x128xf32, #tpu.memory_space<vmem>>, vector<16x128xf32>
    %c16_i32 = arith.constant 16 : i32
    %10 = tpu.dynamic_rotate %9 by %c16_i32 dim 1 : vector<16x128xf32>, i32 -> vector<16x128xf32>
    %11 = arith.addf %9, %10 : vector<16x128xf32>
    %c32_i32 = arith.constant 32 : i32
    %12 = tpu.dynamic_rotate %11 by %c32_i32 dim 1 : vector<16x128xf32>, i32 -> vector<16x128xf32>
    %13 = arith.addf %11, %12 : vector<16x128xf32>
    %c64_i32 = arith.constant 64 : i32
    %14 = tpu.dynamic_rotate %13 by %c64_i32 dim 1 : vector<16x128xf32>, i32 -> vector<16x128xf32>
    %15 = arith.addf %13, %14 : vector<16x128xf32>
    %c0_11 = arith.constant 0 : index
    %c0_12 = arith.constant 0 : index
    %16 = vector.load %arg2[%c0_11, %c0_12] : memref<27x128xf32, #tpu.memory_space<vmem>>, vector<1x128xf32>
    %17 = vector.shape_cast %16 : vector<1x128xf32> to vector<128xf32>
    %18 = vector.shape_cast %17 : vector<128xf32> to vector<1x128xf32>
    %19 = vector.broadcast %18 : vector<1x128xf32> to vector<16x128xf32>
    %20 = arith.mulf %15, %19 : vector<16x128xf32>
    %21 = arith.addf %5, %20 : vector<16x128xf32>
    %c15_i32 = arith.constant 15 : i32
    %22 = tpu.dynamic_rotate %15 by %c15_i32 dim 0 : vector<16x128xf32>, i32 -> vector<16x128xf32>
    %c3 = arith.constant 3 : index
    %c0_13 = arith.constant 0 : index
    %23 = vector.load %arg2[%c3, %c0_13] : memref<27x128xf32, #tpu.memory_space<vmem>>, vector<1x128xf32>
    %24 = vector.shape_cast %23 : vector<1x128xf32> to vector<128xf32>
    %25 = vector.shape_cast %24 : vector<128xf32> to vector<1x128xf32>
    %26 = vector.broadcast %25 : vector<1x128xf32> to vector<16x128xf32>
    %27 = arith.mulf %22, %26 : vector<16x128xf32>
    %28 = arith.addf %21, %27 : vector<16x128xf32>
    %c14_i32 = arith.constant 14 : i32
    %29 = tpu.dynamic_rotate %15 by %c14_i32 dim 0 : vector<16x128xf32>, i32 -> vector<16x128xf32>
    %c6 = arith.constant 6 : index
    %c0_14 = arith.constant 0 : index
    %30 = vector.load %arg2[%c6, %c0_14] : memref<27x128xf32, #tpu.memory_space<vmem>>, vector<1x128xf32>
    %31 = vector.shape_cast %30 : vector<1x128xf32> to vector<128xf32>
    %32 = vector.shape_cast %31 : vector<128xf32> to vector<1x128xf32>
    %33 = vector.broadcast %32 : vector<1x128xf32> to vector<16x128xf32>
    %34 = arith.mulf %29, %33 : vector<16x128xf32>
    %35 = arith.addf %28, %34 : vector<16x128xf32>
    %c127_i32 = arith.constant 127 : i32
    %36 = tpu.dynamic_rotate %15 by %c127_i32 dim 1 : vector<16x128xf32>, i32 -> vector<16x128xf32>
    %c1 = arith.constant 1 : index
    %c0_15 = arith.constant 0 : index
    %37 = vector.load %arg2[%c1, %c0_15] : memref<27x128xf32, #tpu.memory_space<vmem>>, vector<1x128xf32>
    %38 = vector.shape_cast %37 : vector<1x128xf32> to vector<128xf32>
    %39 = vector.shape_cast %38 : vector<128xf32> to vector<1x128xf32>
    %40 = vector.broadcast %39 : vector<1x128xf32> to vector<16x128xf32>
    %41 = arith.mulf %36, %40 : vector<16x128xf32>
    %42 = arith.addf %35, %41 : vector<16x128xf32>
    %c15_i32_16 = arith.constant 15 : i32
    %43 = tpu.dynamic_rotate %36 by %c15_i32_16 dim 0 : vector<16x128xf32>, i32 -> vector<16x128xf32>
    %c4 = arith.constant 4 : index
    %c0_17 = arith.constant 0 : index
    %44 = vector.load %arg2[%c4, %c0_17] : memref<27x128xf32, #tpu.memory_space<vmem>>, vector<1x128xf32>
    %45 = vector.shape_cast %44 : vector<1x128xf32> to vector<128xf32>
    %46 = vector.shape_cast %45 : vector<128xf32> to vector<1x128xf32>
    %47 = vector.broadcast %46 : vector<1x128xf32> to vector<16x128xf32>
    %48 = arith.mulf %43, %47 : vector<16x128xf32>
    %49 = arith.addf %42, %48 : vector<16x128xf32>
    %c14_i32_18 = arith.constant 14 : i32
    %50 = tpu.dynamic_rotate %36 by %c14_i32_18 dim 0 : vector<16x128xf32>, i32 -> vector<16x128xf32>
    %c7 = arith.constant 7 : index
    %c0_19 = arith.constant 0 : index
    %51 = vector.load %arg2[%c7, %c0_19] : memref<27x128xf32, #tpu.memory_space<vmem>>, vector<1x128xf32>
    %52 = vector.shape_cast %51 : vector<1x128xf32> to vector<128xf32>
    %53 = vector.shape_cast %52 : vector<128xf32> to vector<1x128xf32>
    %54 = vector.broadcast %53 : vector<1x128xf32> to vector<16x128xf32>
    %55 = arith.mulf %50, %54 : vector<16x128xf32>
    %56 = arith.addf %49, %55 : vector<16x128xf32>
    %c126_i32 = arith.constant 126 : i32
    %57 = tpu.dynamic_rotate %15 by %c126_i32 dim 1 : vector<16x128xf32>, i32 -> vector<16x128xf32>
    %c2 = arith.constant 2 : index
    %c0_20 = arith.constant 0 : index
    %58 = vector.load %arg2[%c2, %c0_20] : memref<27x128xf32, #tpu.memory_space<vmem>>, vector<1x128xf32>
    %59 = vector.shape_cast %58 : vector<1x128xf32> to vector<128xf32>
    %60 = vector.shape_cast %59 : vector<128xf32> to vector<1x128xf32>
    %61 = vector.broadcast %60 : vector<1x128xf32> to vector<16x128xf32>
    %62 = arith.mulf %57, %61 : vector<16x128xf32>
    %63 = arith.addf %56, %62 : vector<16x128xf32>
    %c15_i32_21 = arith.constant 15 : i32
    %64 = tpu.dynamic_rotate %57 by %c15_i32_21 dim 0 : vector<16x128xf32>, i32 -> vector<16x128xf32>
    %c5 = arith.constant 5 : index
    %c0_22 = arith.constant 0 : index
    %65 = vector.load %arg2[%c5, %c0_22] : memref<27x128xf32, #tpu.memory_space<vmem>>, vector<1x128xf32>
    %66 = vector.shape_cast %65 : vector<1x128xf32> to vector<128xf32>
    %67 = vector.shape_cast %66 : vector<128xf32> to vector<1x128xf32>
    %68 = vector.broadcast %67 : vector<1x128xf32> to vector<16x128xf32>
    %69 = arith.mulf %64, %68 : vector<16x128xf32>
    %70 = arith.addf %63, %69 : vector<16x128xf32>
    %c14_i32_23 = arith.constant 14 : i32
    %71 = tpu.dynamic_rotate %57 by %c14_i32_23 dim 0 : vector<16x128xf32>, i32 -> vector<16x128xf32>
    %c8 = arith.constant 8 : index
    %c0_24 = arith.constant 0 : index
    %72 = vector.load %arg2[%c8, %c0_24] : memref<27x128xf32, #tpu.memory_space<vmem>>, vector<1x128xf32>
    %73 = vector.shape_cast %72 : vector<1x128xf32> to vector<128xf32>
    %74 = vector.shape_cast %73 : vector<128xf32> to vector<1x128xf32>
    %75 = vector.broadcast %74 : vector<1x128xf32> to vector<16x128xf32>
    %76 = arith.mulf %71, %75 : vector<16x128xf32>
    %77 = arith.addf %70, %76 : vector<16x128xf32>
    %c0_25 = arith.constant 0 : index
    %c1_26 = arith.constant 1 : index
    %c0_27 = arith.constant 0 : index
    %c0_28 = arith.constant 0 : index
    %78 = vector.load %arg1[%c0_25, %c1_26, %c0_27, %c0_28] : memref<2x3x16x16xf32, #tpu.memory_space<vmem>>, vector<1x1x16x16xf32>
    %79 = vector.shape_cast %78 : vector<1x1x16x16xf32> to vector<16x16xf32>
    %c0_29 = arith.constant 0 : index
    %c0_30 = arith.constant 0 : index
    %80 = vector.load %arg5[%c0_29, %c0_30] : memref<16x128xf32, #tpu.memory_space<vmem>>, vector<16x16xf32>
    tpu.vector_store %arg5[%c0_29, %c0_30], %79 {strides = array<i32>} : memref<16x128xf32, #tpu.memory_space<vmem>>, vector<16x16xf32>,
    %c0_31 = arith.constant 0 : index
    %c0_32 = arith.constant 0 : index
    %81 = vector.load %arg5[%c0_31, %c0_32] : memref<16x128xf32, #tpu.memory_space<vmem>>, vector<16x128xf32>
    %c16_i32_33 = arith.constant 16 : i32
    %82 = tpu.dynamic_rotate %81 by %c16_i32_33 dim 1 : vector<16x128xf32>, i32 -> vector<16x128xf32>
    %83 = arith.addf %81, %82 : vector<16x128xf32>
    %c32_i32_34 = arith.constant 32 : i32
    %84 = tpu.dynamic_rotate %83 by %c32_i32_34 dim 1 : vector<16x128xf32>, i32 -> vector<16x128xf32>
    %85 = arith.addf %83, %84 : vector<16x128xf32>
    %c64_i32_35 = arith.constant 64 : i32
    %86 = tpu.dynamic_rotate %85 by %c64_i32_35 dim 1 : vector<16x128xf32>, i32 -> vector<16x128xf32>
    %87 = arith.addf %85, %86 : vector<16x128xf32>
    %c9 = arith.constant 9 : index
    %c0_36 = arith.constant 0 : index
    %88 = vector.load %arg2[%c9, %c0_36] : memref<27x128xf32, #tpu.memory_space<vmem>>, vector<1x128xf32>
    %89 = vector.shape_cast %88 : vector<1x128xf32> to vector<128xf32>
    %90 = vector.shape_cast %89 : vector<128xf32> to vector<1x128xf32>
    %91 = vector.broadcast %90 : vector<1x128xf32> to vector<16x128xf32>
    %92 = arith.mulf %87, %91 : vector<16x128xf32>
    %93 = arith.addf %77, %92 : vector<16x128xf32>
    %c15_i32_37 = arith.constant 15 : i32
    %94 = tpu.dynamic_rotate %87 by %c15_i32_37 dim 0 : vector<16x128xf32>, i32 -> vector<16x128xf32>
    %c12 = arith.constant 12 : index
    %c0_38 = arith.constant 0 : index
    %95 = vector.load %arg2[%c12, %c0_38] : memref<27x128xf32, #tpu.memory_space<vmem>>, vector<1x128xf32>
    %96 = vector.shape_cast %95 : vector<1x128xf32> to vector<128xf32>
    %97 = vector.shape_cast %96 : vector<128xf32> to vector<1x128xf32>
    %98 = vector.broadcast %97 : vector<1x128xf32> to vector<16x128xf32>
    %99 = arith.mulf %94, %98 : vector<16x128xf32>
    %100 = arith.addf %93, %99 : vector<16x128xf32>
    %c14_i32_39 = arith.constant 14 : i32
    %101 = tpu.dynamic_rotate %87 by %c14_i32_39 dim 0 : vector<16x128xf32>, i32 -> vector<16x128xf32>
    %c15 = arith.constant 15 : index
    %c0_40 = arith.constant 0 : index
    %102 = vector.load %arg2[%c15, %c0_40] : memref<27x128xf32, #tpu.memory_space<vmem>>, vector<1x128xf32>
    %103 = vector.shape_cast %102 : vector<1x128xf32> to vector<128xf32>
    %104 = vector.shape_cast %103 : vector<128xf32> to vector<1x128xf32>
    %105 = vector.broadcast %104 : vector<1x128xf32> to vector<16x128xf32>
    %106 = arith.mulf %101, %105 : vector<16x128xf32>
    %107 = arith.addf %100, %106 : vector<16x128xf32>
    %c127_i32_41 = arith.constant 127 : i32
    %108 = tpu.dynamic_rotate %87 by %c127_i32_41 dim 1 : vector<16x128xf32>, i32 -> vector<16x128xf32>
    %c10 = arith.constant 10 : index
    %c0_42 = arith.constant 0 : index
    %109 = vector.load %arg2[%c10, %c0_42] : memref<27x128xf32, #tpu.memory_space<vmem>>, vector<1x128xf32>
    %110 = vector.shape_cast %109 : vector<1x128xf32> to vector<128xf32>
    %111 = vector.shape_cast %110 : vector<128xf32> to vector<1x128xf32>
    %112 = vector.broadcast %111 : vector<1x128xf32> to vector<16x128xf32>
    %113 = arith.mulf %108, %112 : vector<16x128xf32>
    %114 = arith.addf %107, %113 : vector<16x128xf32>
    %c15_i32_43 = arith.constant 15 : i32
    %115 = tpu.dynamic_rotate %108 by %c15_i32_43 dim 0 : vector<16x128xf32>, i32 -> vector<16x128xf32>
    %c13 = arith.constant 13 : index
    %c0_44 = arith.constant 0 : index
    %116 = vector.load %arg2[%c13, %c0_44] : memref<27x128xf32, #tpu.memory_space<vmem>>, vector<1x128xf32>
    %117 = vector.shape_cast %116 : vector<1x128xf32> to vector<128xf32>
    %118 = vector.shape_cast %117 : vector<128xf32> to vector<1x128xf32>
    %119 = vector.broadcast %118 : vector<1x128xf32> to vector<16x128xf32>
    %120 = arith.mulf %115, %119 : vector<16x128xf32>
    %121 = arith.addf %114, %120 : vector<16x128xf32>
    %c14_i32_45 = arith.constant 14 : i32
    %122 = tpu.dynamic_rotate %108 by %c14_i32_45 dim 0 : vector<16x128xf32>, i32 -> vector<16x128xf32>
    %c16 = arith.constant 16 : index
    %c0_46 = arith.constant 0 : index
    %123 = vector.load %arg2[%c16, %c0_46] : memref<27x128xf32, #tpu.memory_space<vmem>>, vector<1x128xf32>
    %124 = vector.shape_cast %123 : vector<1x128xf32> to vector<128xf32>
    %125 = vector.shape_cast %124 : vector<128xf32> to vector<1x128xf32>
    %126 = vector.broadcast %125 : vector<1x128xf32> to vector<16x128xf32>
    %127 = arith.mulf %122, %126 : vector<16x128xf32>
    %128 = arith.addf %121, %127 : vector<16x128xf32>
    %c126_i32_47 = arith.constant 126 : i32
    %129 = tpu.dynamic_rotate %87 by %c126_i32_47 dim 1 : vector<16x128xf32>, i32 -> vector<16x128xf32>
    %c11 = arith.constant 11 : index
    %c0_48 = arith.constant 0 : index
    %130 = vector.load %arg2[%c11, %c0_48] : memref<27x128xf32, #tpu.memory_space<vmem>>, vector<1x128xf32>
    %131 = vector.shape_cast %130 : vector<1x128xf32> to vector<128xf32>
    %132 = vector.shape_cast %131 : vector<128xf32> to vector<1x128xf32>
    %133 = vector.broadcast %132 : vector<1x128xf32> to vector<16x128xf32>
    %134 = arith.mulf %129, %133 : vector<16x128xf32>
    %135 = arith.addf %128, %134 : vector<16x128xf32>
    %c15_i32_49 = arith.constant 15 : i32
    %136 = tpu.dynamic_rotate %129 by %c15_i32_49 dim 0 : vector<16x128xf32>, i32 -> vector<16x128xf32>
    %c14 = arith.constant 14 : index
    %c0_50 = arith.constant 0 : index
    %137 = vector.load %arg2[%c14, %c0_50] : memref<27x128xf32, #tpu.memory_space<vmem>>, vector<1x128xf32>
    %138 = vector.shape_cast %137 : vector<1x128xf32> to vector<128xf32>
    %139 = vector.shape_cast %138 : vector<128xf32> to vector<1x128xf32>
    %140 = vector.broadcast %139 : vector<1x128xf32> to vector<16x128xf32>
    %141 = arith.mulf %136, %140 : vector<16x128xf32>
    %142 = arith.addf %135, %141 : vector<16x128xf32>
    %c14_i32_51 = arith.constant 14 : i32
    %143 = tpu.dynamic_rotate %129 by %c14_i32_51 dim 0 : vector<16x128xf32>, i32 -> vector<16x128xf32>
    %c17 = arith.constant 17 : index
    %c0_52 = arith.constant 0 : index
    %144 = vector.load %arg2[%c17, %c0_52] : memref<27x128xf32, #tpu.memory_space<vmem>>, vector<1x128xf32>
    %145 = vector.shape_cast %144 : vector<1x128xf32> to vector<128xf32>
    %146 = vector.shape_cast %145 : vector<128xf32> to vector<1x128xf32>
    %147 = vector.broadcast %146 : vector<1x128xf32> to vector<16x128xf32>
    %148 = arith.mulf %143, %147 : vector<16x128xf32>
    %149 = arith.addf %142, %148 : vector<16x128xf32>
    %c0_53 = arith.constant 0 : index
    %c2_54 = arith.constant 2 : index
    %c0_55 = arith.constant 0 : index
    %c0_56 = arith.constant 0 : index
    %150 = vector.load %arg1[%c0_53, %c2_54, %c0_55, %c0_56] : memref<2x3x16x16xf32, #tpu.memory_space<vmem>>, vector<1x1x16x16xf32>
    %151 = vector.shape_cast %150 : vector<1x1x16x16xf32> to vector<16x16xf32>
    %c0_57 = arith.constant 0 : index
    %c0_58 = arith.constant 0 : index
    %152 = vector.load %arg5[%c0_57, %c0_58] : memref<16x128xf32, #tpu.memory_space<vmem>>, vector<16x16xf32>
    tpu.vector_store %arg5[%c0_57, %c0_58], %151 {strides = array<i32>} : memref<16x128xf32, #tpu.memory_space<vmem>>, vector<16x16xf32>,
    %c0_59 = arith.constant 0 : index
    %c0_60 = arith.constant 0 : index
    %153 = vector.load %arg5[%c0_59, %c0_60] : memref<16x128xf32, #tpu.memory_space<vmem>>, vector<16x128xf32>
    %c16_i32_61 = arith.constant 16 : i32
    %154 = tpu.dynamic_rotate %153 by %c16_i32_61 dim 1 : vector<16x128xf32>, i32 -> vector<16x128xf32>
    %155 = arith.addf %153, %154 : vector<16x128xf32>
    %c32_i32_62 = arith.constant 32 : i32
    %156 = tpu.dynamic_rotate %155 by %c32_i32_62 dim 1 : vector<16x128xf32>, i32 -> vector<16x128xf32>
    %157 = arith.addf %155, %156 : vector<16x128xf32>
    %c64_i32_63 = arith.constant 64 : i32
    %158 = tpu.dynamic_rotate %157 by %c64_i32_63 dim 1 : vector<16x128xf32>, i32 -> vector<16x128xf32>
    %159 = arith.addf %157, %158 : vector<16x128xf32>
    %c18 = arith.constant 18 : index
    %c0_64 = arith.constant 0 : index
    %160 = vector.load %arg2[%c18, %c0_64] : memref<27x128xf32, #tpu.memory_space<vmem>>, vector<1x128xf32>
    %161 = vector.shape_cast %160 : vector<1x128xf32> to vector<128xf32>
    %162 = vector.shape_cast %161 : vector<128xf32> to vector<1x128xf32>
    %163 = vector.broadcast %162 : vector<1x128xf32> to vector<16x128xf32>
    %164 = arith.mulf %159, %163 : vector<16x128xf32>
    %165 = arith.addf %149, %164 : vector<16x128xf32>
    %c15_i32_65 = arith.constant 15 : i32
    %166 = tpu.dynamic_rotate %159 by %c15_i32_65 dim 0 : vector<16x128xf32>, i32 -> vector<16x128xf32>
    %c21 = arith.constant 21 : index
    %c0_66 = arith.constant 0 : index
    %167 = vector.load %arg2[%c21, %c0_66] : memref<27x128xf32, #tpu.memory_space<vmem>>, vector<1x128xf32>
    %168 = vector.shape_cast %167 : vector<1x128xf32> to vector<128xf32>
    %169 = vector.shape_cast %168 : vector<128xf32> to vector<1x128xf32>
    %170 = vector.broadcast %169 : vector<1x128xf32> to vector<16x128xf32>
    %171 = arith.mulf %166, %170 : vector<16x128xf32>
    %172 = arith.addf %165, %171 : vector<16x128xf32>
    %c14_i32_67 = arith.constant 14 : i32
    %173 = tpu.dynamic_rotate %159 by %c14_i32_67 dim 0 : vector<16x128xf32>, i32 -> vector<16x128xf32>
    %c24 = arith.constant 24 : index
    %c0_68 = arith.constant 0 : index
    %174 = vector.load %arg2[%c24, %c0_68] : memref<27x128xf32, #tpu.memory_space<vmem>>, vector<1x128xf32>
    %175 = vector.shape_cast %174 : vector<1x128xf32> to vector<128xf32>
    %176 = vector.shape_cast %175 : vector<128xf32> to vector<1x128xf32>
    %177 = vector.broadcast %176 : vector<1x128xf32> to vector<16x128xf32>
    %178 = arith.mulf %173, %177 : vector<16x128xf32>
    %179 = arith.addf %172, %178 : vector<16x128xf32>
    %c127_i32_69 = arith.constant 127 : i32
    %180 = tpu.dynamic_rotate %159 by %c127_i32_69 dim 1 : vector<16x128xf32>, i32 -> vector<16x128xf32>
    %c19 = arith.constant 19 : index
    %c0_70 = arith.constant 0 : index
    %181 = vector.load %arg2[%c19, %c0_70] : memref<27x128xf32, #tpu.memory_space<vmem>>, vector<1x128xf32>
    %182 = vector.shape_cast %181 : vector<1x128xf32> to vector<128xf32>
    %183 = vector.shape_cast %182 : vector<128xf32> to vector<1x128xf32>
    %184 = vector.broadcast %183 : vector<1x128xf32> to vector<16x128xf32>
    %185 = arith.mulf %180, %184 : vector<16x128xf32>
    %186 = arith.addf %179, %185 : vector<16x128xf32>
    %c15_i32_71 = arith.constant 15 : i32
    %187 = tpu.dynamic_rotate %180 by %c15_i32_71 dim 0 : vector<16x128xf32>, i32 -> vector<16x128xf32>
    %c22 = arith.constant 22 : index
    %c0_72 = arith.constant 0 : index
    %188 = vector.load %arg2[%c22, %c0_72] : memref<27x128xf32, #tpu.memory_space<vmem>>, vector<1x128xf32>
    %189 = vector.shape_cast %188 : vector<1x128xf32> to vector<128xf32>
    %190 = vector.shape_cast %189 : vector<128xf32> to vector<1x128xf32>
    %191 = vector.broadcast %190 : vector<1x128xf32> to vector<16x128xf32>
    %192 = arith.mulf %187, %191 : vector<16x128xf32>
    %193 = arith.addf %186, %192 : vector<16x128xf32>
    %c14_i32_73 = arith.constant 14 : i32
    %194 = tpu.dynamic_rotate %180 by %c14_i32_73 dim 0 : vector<16x128xf32>, i32 -> vector<16x128xf32>
    %c25 = arith.constant 25 : index
    %c0_74 = arith.constant 0 : index
    %195 = vector.load %arg2[%c25, %c0_74] : memref<27x128xf32, #tpu.memory_space<vmem>>, vector<1x128xf32>
    %196 = vector.shape_cast %195 : vector<1x128xf32> to vector<128xf32>
    %197 = vector.shape_cast %196 : vector<128xf32> to vector<1x128xf32>
    %198 = vector.broadcast %197 : vector<1x128xf32> to vector<16x128xf32>
    %199 = arith.mulf %194, %198 : vector<16x128xf32>
    %200 = arith.addf %193, %199 : vector<16x128xf32>
    %c126_i32_75 = arith.constant 126 : i32
    %201 = tpu.dynamic_rotate %159 by %c126_i32_75 dim 1 : vector<16x128xf32>, i32 -> vector<16x128xf32>
    %c20 = arith.constant 20 : index
    %c0_76 = arith.constant 0 : index
    %202 = vector.load %arg2[%c20, %c0_76] : memref<27x128xf32, #tpu.memory_space<vmem>>, vector<1x128xf32>
    %203 = vector.shape_cast %202 : vector<1x128xf32> to vector<128xf32>
    %204 = vector.shape_cast %203 : vector<128xf32> to vector<1x128xf32>
    %205 = vector.broadcast %204 : vector<1x128xf32> to vector<16x128xf32>
    %206 = arith.mulf %201, %205 : vector<16x128xf32>
    %207 = arith.addf %200, %206 : vector<16x128xf32>
    %c15_i32_77 = arith.constant 15 : i32
    %208 = tpu.dynamic_rotate %201 by %c15_i32_77 dim 0 : vector<16x128xf32>, i32 -> vector<16x128xf32>
    %c23 = arith.constant 23 : index
    %c0_78 = arith.constant 0 : index
    %209 = vector.load %arg2[%c23, %c0_78] : memref<27x128xf32, #tpu.memory_space<vmem>>, vector<1x128xf32>
    %210 = vector.shape_cast %209 : vector<1x128xf32> to vector<128xf32>
    %211 = vector.shape_cast %210 : vector<128xf32> to vector<1x128xf32>
    %212 = vector.broadcast %211 : vector<1x128xf32> to vector<16x128xf32>
    %213 = arith.mulf %208, %212 : vector<16x128xf32>
    %214 = arith.addf %207, %213 : vector<16x128xf32>
    %c14_i32_79 = arith.constant 14 : i32
    %215 = tpu.dynamic_rotate %201 by %c14_i32_79 dim 0 : vector<16x128xf32>, i32 -> vector<16x128xf32>
    %c26 = arith.constant 26 : index
    %c0_80 = arith.constant 0 : index
    %216 = vector.load %arg2[%c26, %c0_80] : memref<27x128xf32, #tpu.memory_space<vmem>>, vector<1x128xf32>
    %217 = vector.shape_cast %216 : vector<1x128xf32> to vector<128xf32>
    %218 = vector.shape_cast %217 : vector<128xf32> to vector<1x128xf32>
    %219 = vector.broadcast %218 : vector<1x128xf32> to vector<16x128xf32>
    %220 = arith.mulf %215, %219 : vector<16x128xf32>
    %221 = arith.addf %214, %220 : vector<16x128xf32>
    %222 = vector.extract_strided_slice %221 {offsets = [0, 0], sizes = [14, 128], strides = [1, 1]} : vector<16x128xf32> to vector<14x128xf32>
    %c0_81 = arith.constant 0 : index
    %c0_82 = arith.constant 0 : index
    %c0_83 = arith.constant 0 : index
    %223 = vector.load %arg4[%c0_81, %c0_82, %c0_83] : memref<2x14x128xf32, #tpu.memory_space<vmem>>, vector<1x14x128xf32>
    %224 = vector.shape_cast %223 : vector<1x14x128xf32> to vector<14x128xf32>
    %225 = vector.shape_cast %222 : vector<14x128xf32> to vector<1x14x128xf32>
    tpu.vector_store %arg4[%c0_81, %c0_82, %c0_83], %225 {strides = array<i32>} : memref<2x14x128xf32, #tpu.memory_space<vmem>>, vector<1x14x128xf32>,
    %226 = vector.shape_cast %3 : vector<128xf32> to vector<1x128xf32>
    %227 = vector.broadcast %226 : vector<1x128xf32> to vector<16x128xf32>
    %c1_84 = arith.constant 1 : index
    %c0_85 = arith.constant 0 : index
    %c0_86 = arith.constant 0 : index
    %c0_87 = arith.constant 0 : index
    %228 = vector.load %arg1[%c1_84, %c0_85, %c0_86, %c0_87] : memref<2x3x16x16xf32, #tpu.memory_space<vmem>>, vector<1x1x16x16xf32>
    %229 = vector.shape_cast %228 : vector<1x1x16x16xf32> to vector<16x16xf32>
    %c0_88 = arith.constant 0 : index
    %c0_89 = arith.constant 0 : index
    %230 = vector.load %arg5[%c0_88, %c0_89] : memref<16x128xf32, #tpu.memory_space<vmem>>, vector<16x16xf32>
    tpu.vector_store %arg5[%c0_88, %c0_89], %229 {strides = array<i32>} : memref<16x128xf32, #tpu.memory_space<vmem>>, vector<16x16xf32>,
    %c0_90 = arith.constant 0 : index
    %c0_91 = arith.constant 0 : index
    %231 = vector.load %arg5[%c0_90, %c0_91] : memref<16x128xf32, #tpu.memory_space<vmem>>, vector<16x128xf32>
    %c16_i32_92 = arith.constant 16 : i32
    %232 = tpu.dynamic_rotate %231 by %c16_i32_92 dim 1 : vector<16x128xf32>, i32 -> vector<16x128xf32>
    %233 = arith.addf %231, %232 : vector<16x128xf32>
    %c32_i32_93 = arith.constant 32 : i32
    %234 = tpu.dynamic_rotate %233 by %c32_i32_93 dim 1 : vector<16x128xf32>, i32 -> vector<16x128xf32>
    %235 = arith.addf %233, %234 : vector<16x128xf32>
    %c64_i32_94 = arith.constant 64 : i32
    %236 = tpu.dynamic_rotate %235 by %c64_i32_94 dim 1 : vector<16x128xf32>, i32 -> vector<16x128xf32>
    %237 = arith.addf %235, %236 : vector<16x128xf32>
    %c0_95 = arith.constant 0 : index
    %c0_96 = arith.constant 0 : index
    %238 = vector.load %arg2[%c0_95, %c0_96] : memref<27x128xf32, #tpu.memory_space<vmem>>, vector<1x128xf32>
    %239 = vector.shape_cast %238 : vector<1x128xf32> to vector<128xf32>
    %240 = vector.shape_cast %239 : vector<128xf32> to vector<1x128xf32>
    %241 = vector.broadcast %240 : vector<1x128xf32> to vector<16x128xf32>
    %242 = arith.mulf %237, %241 : vector<16x128xf32>
    %243 = arith.addf %227, %242 : vector<16x128xf32>
    %c15_i32_97 = arith.constant 15 : i32
    %244 = tpu.dynamic_rotate %237 by %c15_i32_97 dim 0 : vector<16x128xf32>, i32 -> vector<16x128xf32>
    %c3_98 = arith.constant 3 : index
    %c0_99 = arith.constant 0 : index
    %245 = vector.load %arg2[%c3_98, %c0_99] : memref<27x128xf32, #tpu.memory_space<vmem>>, vector<1x128xf32>
    %246 = vector.shape_cast %245 : vector<1x128xf32> to vector<128xf32>
    %247 = vector.shape_cast %246 : vector<128xf32> to vector<1x128xf32>
    %248 = vector.broadcast %247 : vector<1x128xf32> to vector<16x128xf32>
    %249 = arith.mulf %244, %248 : vector<16x128xf32>
    %250 = arith.addf %243, %249 : vector<16x128xf32>
    %c14_i32_100 = arith.constant 14 : i32
    %251 = tpu.dynamic_rotate %237 by %c14_i32_100 dim 0 : vector<16x128xf32>, i32 -> vector<16x128xf32>
    %c6_101 = arith.constant 6 : index
    %c0_102 = arith.constant 0 : index
    %252 = vector.load %arg2[%c6_101, %c0_102] : memref<27x128xf32, #tpu.memory_space<vmem>>, vector<1x128xf32>
    %253 = vector.shape_cast %252 : vector<1x128xf32> to vector<128xf32>
    %254 = vector.shape_cast %253 : vector<128xf32> to vector<1x128xf32>
    %255 = vector.broadcast %254 : vector<1x128xf32> to vector<16x128xf32>
    %256 = arith.mulf %251, %255 : vector<16x128xf32>
    %257 = arith.addf %250, %256 : vector<16x128xf32>
    %c127_i32_103 = arith.constant 127 : i32
    %258 = tpu.dynamic_rotate %237 by %c127_i32_103 dim 1 : vector<16x128xf32>, i32 -> vector<16x128xf32>
    %c1_104 = arith.constant 1 : index
    %c0_105 = arith.constant 0 : index
    %259 = vector.load %arg2[%c1_104, %c0_105] : memref<27x128xf32, #tpu.memory_space<vmem>>, vector<1x128xf32>
    %260 = vector.shape_cast %259 : vector<1x128xf32> to vector<128xf32>
    %261 = vector.shape_cast %260 : vector<128xf32> to vector<1x128xf32>
    %262 = vector.broadcast %261 : vector<1x128xf32> to vector<16x128xf32>
    %263 = arith.mulf %258, %262 : vector<16x128xf32>
    %264 = arith.addf %257, %263 : vector<16x128xf32>
    %c15_i32_106 = arith.constant 15 : i32
    %265 = tpu.dynamic_rotate %258 by %c15_i32_106 dim 0 : vector<16x128xf32>, i32 -> vector<16x128xf32>
    %c4_107 = arith.constant 4 : index
    %c0_108 = arith.constant 0 : index
    %266 = vector.load %arg2[%c4_107, %c0_108] : memref<27x128xf32, #tpu.memory_space<vmem>>, vector<1x128xf32>
    %267 = vector.shape_cast %266 : vector<1x128xf32> to vector<128xf32>
    %268 = vector.shape_cast %267 : vector<128xf32> to vector<1x128xf32>
    %269 = vector.broadcast %268 : vector<1x128xf32> to vector<16x128xf32>
    %270 = arith.mulf %265, %269 : vector<16x128xf32>
    %271 = arith.addf %264, %270 : vector<16x128xf32>
    %c14_i32_109 = arith.constant 14 : i32
    %272 = tpu.dynamic_rotate %258 by %c14_i32_109 dim 0 : vector<16x128xf32>, i32 -> vector<16x128xf32>
    %c7_110 = arith.constant 7 : index
    %c0_111 = arith.constant 0 : index
    %273 = vector.load %arg2[%c7_110, %c0_111] : memref<27x128xf32, #tpu.memory_space<vmem>>, vector<1x128xf32>
    %274 = vector.shape_cast %273 : vector<1x128xf32> to vector<128xf32>
    %275 = vector.shape_cast %274 : vector<128xf32> to vector<1x128xf32>
    %276 = vector.broadcast %275 : vector<1x128xf32> to vector<16x128xf32>
    %277 = arith.mulf %272, %276 : vector<16x128xf32>
    %278 = arith.addf %271, %277 : vector<16x128xf32>
    %c126_i32_112 = arith.constant 126 : i32
    %279 = tpu.dynamic_rotate %237 by %c126_i32_112 dim 1 : vector<16x128xf32>, i32 -> vector<16x128xf32>
    %c2_113 = arith.constant 2 : index
    %c0_114 = arith.constant 0 : index
    %280 = vector.load %arg2[%c2_113, %c0_114] : memref<27x128xf32, #tpu.memory_space<vmem>>, vector<1x128xf32>
    %281 = vector.shape_cast %280 : vector<1x128xf32> to vector<128xf32>
    %282 = vector.shape_cast %281 : vector<128xf32> to vector<1x128xf32>
    %283 = vector.broadcast %282 : vector<1x128xf32> to vector<16x128xf32>
    %284 = arith.mulf %279, %283 : vector<16x128xf32>
    %285 = arith.addf %278, %284 : vector<16x128xf32>
    %c15_i32_115 = arith.constant 15 : i32
    %286 = tpu.dynamic_rotate %279 by %c15_i32_115 dim 0 : vector<16x128xf32>, i32 -> vector<16x128xf32>
    %c5_116 = arith.constant 5 : index
    %c0_117 = arith.constant 0 : index
    %287 = vector.load %arg2[%c5_116, %c0_117] : memref<27x128xf32, #tpu.memory_space<vmem>>, vector<1x128xf32>
    %288 = vector.shape_cast %287 : vector<1x128xf32> to vector<128xf32>
    %289 = vector.shape_cast %288 : vector<128xf32> to vector<1x128xf32>
    %290 = vector.broadcast %289 : vector<1x128xf32> to vector<16x128xf32>
    %291 = arith.mulf %286, %290 : vector<16x128xf32>
    %292 = arith.addf %285, %291 : vector<16x128xf32>
    %c14_i32_118 = arith.constant 14 : i32
    %293 = tpu.dynamic_rotate %279 by %c14_i32_118 dim 0 : vector<16x128xf32>, i32 -> vector<16x128xf32>
    %c8_119 = arith.constant 8 : index
    %c0_120 = arith.constant 0 : index
    %294 = vector.load %arg2[%c8_119, %c0_120] : memref<27x128xf32, #tpu.memory_space<vmem>>, vector<1x128xf32>
    %295 = vector.shape_cast %294 : vector<1x128xf32> to vector<128xf32>
    %296 = vector.shape_cast %295 : vector<128xf32> to vector<1x128xf32>
    %297 = vector.broadcast %296 : vector<1x128xf32> to vector<16x128xf32>
    %298 = arith.mulf %293, %297 : vector<16x128xf32>
    %299 = arith.addf %292, %298 : vector<16x128xf32>
    %c1_121 = arith.constant 1 : index
    %c1_122 = arith.constant 1 : index
    %c0_123 = arith.constant 0 : index
    %c0_124 = arith.constant 0 : index
    %300 = vector.load %arg1[%c1_121, %c1_122, %c0_123, %c0_124] : memref<2x3x16x16xf32, #tpu.memory_space<vmem>>, vector<1x1x16x16xf32>
    %301 = vector.shape_cast %300 : vector<1x1x16x16xf32> to vector<16x16xf32>
    %c0_125 = arith.constant 0 : index
    %c0_126 = arith.constant 0 : index
    %302 = vector.load %arg5[%c0_125, %c0_126] : memref<16x128xf32, #tpu.memory_space<vmem>>, vector<16x16xf32>
    tpu.vector_store %arg5[%c0_125, %c0_126], %301 {strides = array<i32>} : memref<16x128xf32, #tpu.memory_space<vmem>>, vector<16x16xf32>,
    %c0_127 = arith.constant 0 : index
    %c0_128 = arith.constant 0 : index
    %303 = vector.load %arg5[%c0_127, %c0_128] : memref<16x128xf32, #tpu.memory_space<vmem>>, vector<16x128xf32>
    %c16_i32_129 = arith.constant 16 : i32
    %304 = tpu.dynamic_rotate %303 by %c16_i32_129 dim 1 : vector<16x128xf32>, i32 -> vector<16x128xf32>
    %305 = arith.addf %303, %304 : vector<16x128xf32>
    %c32_i32_130 = arith.constant 32 : i32
    %306 = tpu.dynamic_rotate %305 by %c32_i32_130 dim 1 : vector<16x128xf32>, i32 -> vector<16x128xf32>
    %307 = arith.addf %305, %306 : vector<16x128xf32>
    %c64_i32_131 = arith.constant 64 : i32
    %308 = tpu.dynamic_rotate %307 by %c64_i32_131 dim 1 : vector<16x128xf32>, i32 -> vector<16x128xf32>
    %309 = arith.addf %307, %308 : vector<16x128xf32>
    %c9_132 = arith.constant 9 : index
    %c0_133 = arith.constant 0 : index
    %310 = vector.load %arg2[%c9_132, %c0_133] : memref<27x128xf32, #tpu.memory_space<vmem>>, vector<1x128xf32>
    %311 = vector.shape_cast %310 : vector<1x128xf32> to vector<128xf32>
    %312 = vector.shape_cast %311 : vector<128xf32> to vector<1x128xf32>
    %313 = vector.broadcast %312 : vector<1x128xf32> to vector<16x128xf32>
    %314 = arith.mulf %309, %313 : vector<16x128xf32>
    %315 = arith.addf %299, %314 : vector<16x128xf32>
    %c15_i32_134 = arith.constant 15 : i32
    %316 = tpu.dynamic_rotate %309 by %c15_i32_134 dim 0 : vector<16x128xf32>, i32 -> vector<16x128xf32>
    %c12_135 = arith.constant 12 : index
    %c0_136 = arith.constant 0 : index
    %317 = vector.load %arg2[%c12_135, %c0_136] : memref<27x128xf32, #tpu.memory_space<vmem>>, vector<1x128xf32>
    %318 = vector.shape_cast %317 : vector<1x128xf32> to vector<128xf32>
    %319 = vector.shape_cast %318 : vector<128xf32> to vector<1x128xf32>
    %320 = vector.broadcast %319 : vector<1x128xf32> to vector<16x128xf32>
    %321 = arith.mulf %316, %320 : vector<16x128xf32>
    %322 = arith.addf %315, %321 : vector<16x128xf32>
    %c14_i32_137 = arith.constant 14 : i32
    %323 = tpu.dynamic_rotate %309 by %c14_i32_137 dim 0 : vector<16x128xf32>, i32 -> vector<16x128xf32>
    %c15_138 = arith.constant 15 : index
    %c0_139 = arith.constant 0 : index
    %324 = vector.load %arg2[%c15_138, %c0_139] : memref<27x128xf32, #tpu.memory_space<vmem>>, vector<1x128xf32>
    %325 = vector.shape_cast %324 : vector<1x128xf32> to vector<128xf32>
    %326 = vector.shape_cast %325 : vector<128xf32> to vector<1x128xf32>
    %327 = vector.broadcast %326 : vector<1x128xf32> to vector<16x128xf32>
    %328 = arith.mulf %323, %327 : vector<16x128xf32>
    %329 = arith.addf %322, %328 : vector<16x128xf32>
    %c127_i32_140 = arith.constant 127 : i32
    %330 = tpu.dynamic_rotate %309 by %c127_i32_140 dim 1 : vector<16x128xf32>, i32 -> vector<16x128xf32>
    %c10_141 = arith.constant 10 : index
    %c0_142 = arith.constant 0 : index
    %331 = vector.load %arg2[%c10_141, %c0_142] : memref<27x128xf32, #tpu.memory_space<vmem>>, vector<1x128xf32>
    %332 = vector.shape_cast %331 : vector<1x128xf32> to vector<128xf32>
    %333 = vector.shape_cast %332 : vector<128xf32> to vector<1x128xf32>
    %334 = vector.broadcast %333 : vector<1x128xf32> to vector<16x128xf32>
    %335 = arith.mulf %330, %334 : vector<16x128xf32>
    %336 = arith.addf %329, %335 : vector<16x128xf32>
    %c15_i32_143 = arith.constant 15 : i32
    %337 = tpu.dynamic_rotate %330 by %c15_i32_143 dim 0 : vector<16x128xf32>, i32 -> vector<16x128xf32>
    %c13_144 = arith.constant 13 : index
    %c0_145 = arith.constant 0 : index
    %338 = vector.load %arg2[%c13_144, %c0_145] : memref<27x128xf32, #tpu.memory_space<vmem>>, vector<1x128xf32>
    %339 = vector.shape_cast %338 : vector<1x128xf32> to vector<128xf32>
    %340 = vector.shape_cast %339 : vector<128xf32> to vector<1x128xf32>
    %341 = vector.broadcast %340 : vector<1x128xf32> to vector<16x128xf32>
    %342 = arith.mulf %337, %341 : vector<16x128xf32>
    %343 = arith.addf %336, %342 : vector<16x128xf32>
    %c14_i32_146 = arith.constant 14 : i32
    %344 = tpu.dynamic_rotate %330 by %c14_i32_146 dim 0 : vector<16x128xf32>, i32 -> vector<16x128xf32>
    %c16_147 = arith.constant 16 : index
    %c0_148 = arith.constant 0 : index
    %345 = vector.load %arg2[%c16_147, %c0_148] : memref<27x128xf32, #tpu.memory_space<vmem>>, vector<1x128xf32>
    %346 = vector.shape_cast %345 : vector<1x128xf32> to vector<128xf32>
    %347 = vector.shape_cast %346 : vector<128xf32> to vector<1x128xf32>
    %348 = vector.broadcast %347 : vector<1x128xf32> to vector<16x128xf32>
    %349 = arith.mulf %344, %348 : vector<16x128xf32>
    %350 = arith.addf %343, %349 : vector<16x128xf32>
    %c126_i32_149 = arith.constant 126 : i32
    %351 = tpu.dynamic_rotate %309 by %c126_i32_149 dim 1 : vector<16x128xf32>, i32 -> vector<16x128xf32>
    %c11_150 = arith.constant 11 : index
    %c0_151 = arith.constant 0 : index
    %352 = vector.load %arg2[%c11_150, %c0_151] : memref<27x128xf32, #tpu.memory_space<vmem>>, vector<1x128xf32>
    %353 = vector.shape_cast %352 : vector<1x128xf32> to vector<128xf32>
    %354 = vector.shape_cast %353 : vector<128xf32> to vector<1x128xf32>
    %355 = vector.broadcast %354 : vector<1x128xf32> to vector<16x128xf32>
    %356 = arith.mulf %351, %355 : vector<16x128xf32>
    %357 = arith.addf %350, %356 : vector<16x128xf32>
    %c15_i32_152 = arith.constant 15 : i32
    %358 = tpu.dynamic_rotate %351 by %c15_i32_152 dim 0 : vector<16x128xf32>, i32 -> vector<16x128xf32>
    %c14_153 = arith.constant 14 : index
    %c0_154 = arith.constant 0 : index
    %359 = vector.load %arg2[%c14_153, %c0_154] : memref<27x128xf32, #tpu.memory_space<vmem>>, vector<1x128xf32>
    %360 = vector.shape_cast %359 : vector<1x128xf32> to vector<128xf32>
    %361 = vector.shape_cast %360 : vector<128xf32> to vector<1x128xf32>
    %362 = vector.broadcast %361 : vector<1x128xf32> to vector<16x128xf32>
    %363 = arith.mulf %358, %362 : vector<16x128xf32>
    %364 = arith.addf %357, %363 : vector<16x128xf32>
    %c14_i32_155 = arith.constant 14 : i32
    %365 = tpu.dynamic_rotate %351 by %c14_i32_155 dim 0 : vector<16x128xf32>, i32 -> vector<16x128xf32>
    %c17_156 = arith.constant 17 : index
    %c0_157 = arith.constant 0 : index
    %366 = vector.load %arg2[%c17_156, %c0_157] : memref<27x128xf32, #tpu.memory_space<vmem>>, vector<1x128xf32>
    %367 = vector.shape_cast %366 : vector<1x128xf32> to vector<128xf32>
    %368 = vector.shape_cast %367 : vector<128xf32> to vector<1x128xf32>
    %369 = vector.broadcast %368 : vector<1x128xf32> to vector<16x128xf32>
    %370 = arith.mulf %365, %369 : vector<16x128xf32>
    %371 = arith.addf %364, %370 : vector<16x128xf32>
    %c1_158 = arith.constant 1 : index
    %c2_159 = arith.constant 2 : index
    %c0_160 = arith.constant 0 : index
    %c0_161 = arith.constant 0 : index
    %372 = vector.load %arg1[%c1_158, %c2_159, %c0_160, %c0_161] : memref<2x3x16x16xf32, #tpu.memory_space<vmem>>, vector<1x1x16x16xf32>
    %373 = vector.shape_cast %372 : vector<1x1x16x16xf32> to vector<16x16xf32>
    %c0_162 = arith.constant 0 : index
    %c0_163 = arith.constant 0 : index
    %374 = vector.load %arg5[%c0_162, %c0_163] : memref<16x128xf32, #tpu.memory_space<vmem>>, vector<16x16xf32>
    tpu.vector_store %arg5[%c0_162, %c0_163], %373 {strides = array<i32>} : memref<16x128xf32, #tpu.memory_space<vmem>>, vector<16x16xf32>,
    %c0_164 = arith.constant 0 : index
    %c0_165 = arith.constant 0 : index
    %375 = vector.load %arg5[%c0_164, %c0_165] : memref<16x128xf32, #tpu.memory_space<vmem>>, vector<16x128xf32>
    %c16_i32_166 = arith.constant 16 : i32
    %376 = tpu.dynamic_rotate %375 by %c16_i32_166 dim 1 : vector<16x128xf32>, i32 -> vector<16x128xf32>
    %377 = arith.addf %375, %376 : vector<16x128xf32>
    %c32_i32_167 = arith.constant 32 : i32
    %378 = tpu.dynamic_rotate %377 by %c32_i32_167 dim 1 : vector<16x128xf32>, i32 -> vector<16x128xf32>
    %379 = arith.addf %377, %378 : vector<16x128xf32>
    %c64_i32_168 = arith.constant 64 : i32
    %380 = tpu.dynamic_rotate %379 by %c64_i32_168 dim 1 : vector<16x128xf32>, i32 -> vector<16x128xf32>
    %381 = arith.addf %379, %380 : vector<16x128xf32>
    %c18_169 = arith.constant 18 : index
    %c0_170 = arith.constant 0 : index
    %382 = vector.load %arg2[%c18_169, %c0_170] : memref<27x128xf32, #tpu.memory_space<vmem>>, vector<1x128xf32>
    %383 = vector.shape_cast %382 : vector<1x128xf32> to vector<128xf32>
    %384 = vector.shape_cast %383 : vector<128xf32> to vector<1x128xf32>
    %385 = vector.broadcast %384 : vector<1x128xf32> to vector<16x128xf32>
    %386 = arith.mulf %381, %385 : vector<16x128xf32>
    %387 = arith.addf %371, %386 : vector<16x128xf32>
    %c15_i32_171 = arith.constant 15 : i32
    %388 = tpu.dynamic_rotate %381 by %c15_i32_171 dim 0 : vector<16x128xf32>, i32 -> vector<16x128xf32>
    %c21_172 = arith.constant 21 : index
    %c0_173 = arith.constant 0 : index
    %389 = vector.load %arg2[%c21_172, %c0_173] : memref<27x128xf32, #tpu.memory_space<vmem>>, vector<1x128xf32>
    %390 = vector.shape_cast %389 : vector<1x128xf32> to vector<128xf32>
    %391 = vector.shape_cast %390 : vector<128xf32> to vector<1x128xf32>
    %392 = vector.broadcast %391 : vector<1x128xf32> to vector<16x128xf32>
    %393 = arith.mulf %388, %392 : vector<16x128xf32>
    %394 = arith.addf %387, %393 : vector<16x128xf32>
    %c14_i32_174 = arith.constant 14 : i32
    %395 = tpu.dynamic_rotate %381 by %c14_i32_174 dim 0 : vector<16x128xf32>, i32 -> vector<16x128xf32>
    %c24_175 = arith.constant 24 : index
    %c0_176 = arith.constant 0 : index
    %396 = vector.load %arg2[%c24_175, %c0_176] : memref<27x128xf32, #tpu.memory_space<vmem>>, vector<1x128xf32>
    %397 = vector.shape_cast %396 : vector<1x128xf32> to vector<128xf32>
    %398 = vector.shape_cast %397 : vector<128xf32> to vector<1x128xf32>
    %399 = vector.broadcast %398 : vector<1x128xf32> to vector<16x128xf32>
    %400 = arith.mulf %395, %399 : vector<16x128xf32>
    %401 = arith.addf %394, %400 : vector<16x128xf32>
    %c127_i32_177 = arith.constant 127 : i32
    %402 = tpu.dynamic_rotate %381 by %c127_i32_177 dim 1 : vector<16x128xf32>, i32 -> vector<16x128xf32>
    %c19_178 = arith.constant 19 : index
    %c0_179 = arith.constant 0 : index
    %403 = vector.load %arg2[%c19_178, %c0_179] : memref<27x128xf32, #tpu.memory_space<vmem>>, vector<1x128xf32>
    %404 = vector.shape_cast %403 : vector<1x128xf32> to vector<128xf32>
    %405 = vector.shape_cast %404 : vector<128xf32> to vector<1x128xf32>
    %406 = vector.broadcast %405 : vector<1x128xf32> to vector<16x128xf32>
    %407 = arith.mulf %402, %406 : vector<16x128xf32>
    %408 = arith.addf %401, %407 : vector<16x128xf32>
    %c15_i32_180 = arith.constant 15 : i32
    %409 = tpu.dynamic_rotate %402 by %c15_i32_180 dim 0 : vector<16x128xf32>, i32 -> vector<16x128xf32>
    %c22_181 = arith.constant 22 : index
    %c0_182 = arith.constant 0 : index
    %410 = vector.load %arg2[%c22_181, %c0_182] : memref<27x128xf32, #tpu.memory_space<vmem>>, vector<1x128xf32>
    %411 = vector.shape_cast %410 : vector<1x128xf32> to vector<128xf32>
    %412 = vector.shape_cast %411 : vector<128xf32> to vector<1x128xf32>
    %413 = vector.broadcast %412 : vector<1x128xf32> to vector<16x128xf32>
    %414 = arith.mulf %409, %413 : vector<16x128xf32>
    %415 = arith.addf %408, %414 : vector<16x128xf32>
    %c14_i32_183 = arith.constant 14 : i32
    %416 = tpu.dynamic_rotate %402 by %c14_i32_183 dim 0 : vector<16x128xf32>, i32 -> vector<16x128xf32>
    %c25_184 = arith.constant 25 : index
    %c0_185 = arith.constant 0 : index
    %417 = vector.load %arg2[%c25_184, %c0_185] : memref<27x128xf32, #tpu.memory_space<vmem>>, vector<1x128xf32>
    %418 = vector.shape_cast %417 : vector<1x128xf32> to vector<128xf32>
    %419 = vector.shape_cast %418 : vector<128xf32> to vector<1x128xf32>
    %420 = vector.broadcast %419 : vector<1x128xf32> to vector<16x128xf32>
    %421 = arith.mulf %416, %420 : vector<16x128xf32>
    %422 = arith.addf %415, %421 : vector<16x128xf32>
    %c126_i32_186 = arith.constant 126 : i32
    %423 = tpu.dynamic_rotate %381 by %c126_i32_186 dim 1 : vector<16x128xf32>, i32 -> vector<16x128xf32>
    %c20_187 = arith.constant 20 : index
    %c0_188 = arith.constant 0 : index
    %424 = vector.load %arg2[%c20_187, %c0_188] : memref<27x128xf32, #tpu.memory_space<vmem>>, vector<1x128xf32>
    %425 = vector.shape_cast %424 : vector<1x128xf32> to vector<128xf32>
    %426 = vector.shape_cast %425 : vector<128xf32> to vector<1x128xf32>
    %427 = vector.broadcast %426 : vector<1x128xf32> to vector<16x128xf32>
    %428 = arith.mulf %423, %427 : vector<16x128xf32>
    %429 = arith.addf %422, %428 : vector<16x128xf32>
    %c15_i32_189 = arith.constant 15 : i32
    %430 = tpu.dynamic_rotate %423 by %c15_i32_189 dim 0 : vector<16x128xf32>, i32 -> vector<16x128xf32>
    %c23_190 = arith.constant 23 : index
    %c0_191 = arith.constant 0 : index
    %431 = vector.load %arg2[%c23_190, %c0_191] : memref<27x128xf32, #tpu.memory_space<vmem>>, vector<1x128xf32>
    %432 = vector.shape_cast %431 : vector<1x128xf32> to vector<128xf32>
    %433 = vector.shape_cast %432 : vector<128xf32> to vector<1x128xf32>
    %434 = vector.broadcast %433 : vector<1x128xf32> to vector<16x128xf32>
    %435 = arith.mulf %430, %434 : vector<16x128xf32>
    %436 = arith.addf %429, %435 : vector<16x128xf32>
    %c14_i32_192 = arith.constant 14 : i32
    %437 = tpu.dynamic_rotate %423 by %c14_i32_192 dim 0 : vector<16x128xf32>, i32 -> vector<16x128xf32>
    %c26_193 = arith.constant 26 : index
    %c0_194 = arith.constant 0 : index
    %438 = vector.load %arg2[%c26_193, %c0_194] : memref<27x128xf32, #tpu.memory_space<vmem>>, vector<1x128xf32>
    %439 = vector.shape_cast %438 : vector<1x128xf32> to vector<128xf32>
    %440 = vector.shape_cast %439 : vector<128xf32> to vector<1x128xf32>
    %441 = vector.broadcast %440 : vector<1x128xf32> to vector<16x128xf32>
    %442 = arith.mulf %437, %441 : vector<16x128xf32>
    %443 = arith.addf %436, %442 : vector<16x128xf32>
    %444 = vector.extract_strided_slice %443 {offsets = [0, 0], sizes = [14, 128], strides = [1, 1]} : vector<16x128xf32> to vector<14x128xf32>
    %c1_195 = arith.constant 1 : index
    %c0_196 = arith.constant 0 : index
    %c0_197 = arith.constant 0 : index
    %445 = vector.load %arg4[%c1_195, %c0_196, %c0_197] : memref<2x14x128xf32, #tpu.memory_space<vmem>>, vector<1x14x128xf32>
    %446 = vector.shape_cast %445 : vector<1x14x128xf32> to vector<14x128xf32>
    %447 = vector.shape_cast %444 : vector<14x128xf32> to vector<1x14x128xf32>
    tpu.vector_store %arg4[%c1_195, %c0_196, %c0_197], %447 {strides = array<i32>} : memref<2x14x128xf32, #tpu.memory_space<vmem>>, vector<1x14x128xf32>,
    return
  }
  func.func @transform_0(%arg0: i32) -> (i32, i32, i32, i32) {
    %c0_i32 = arith.constant 0 : i32
    %c0_i32_0 = arith.constant 0 : i32
    %c0_i32_1 = arith.constant 0 : i32
    %c0_i32_2 = arith.constant 0 : i32
    return %arg0, %c0_i32, %c0_i32_0, %c0_i32_1 : i32, i32, i32, i32
  }
  func.func @transform_1(%arg0: i32) -> (i32, i32) {
    %c0_i32 = arith.constant 0 : i32
    %c0_i32_0 = arith.constant 0 : i32
    %c0_i32_1 = arith.constant 0 : i32
    return %c0_i32, %c0_i32_0 : i32, i32
  }
  func.func @transform_2(%arg0: i32) -> (i32, i32) {
    %c0_i32 = arith.constant 0 : i32
    %c0_i32_0 = arith.constant 0 : i32
    %c0_i32_1 = arith.constant 0 : i32
    return %c0_i32, %c0_i32_0 : i32, i32
  }
  func.func @transform_3(%arg0: i32) -> (i32, i32, i32) {
    %c0_i32 = arith.constant 0 : i32
    %c0_i32_0 = arith.constant 0 : i32
    %c0_i32_1 = arith.constant 0 : i32
    return %arg0, %c0_i32, %c0_i32_0 : i32, i32, i32
  }
}

</mosaic_0001>

<bundles_post_ra>
// kernel: conv2d_pallas.1
= control target key start
LH: loop header
LB: loop body
LE: loop exit
PB: predicated region body
PF: predicated region fallthrough
CT: control target
= control target key end

     0   :  { %vm25_vm0 = vcmask 130048   ;;  %v937_v0 = vmov 0.0   ;;  %s938_s20 = smov 16   ;;  %s940_s10 = smov 64   ;;  %s1560_s0 = inlined_call_operand.vmem [shape: f32[2,3,16,16], index: 0, kind: input, shape index: {}]   ;;  %s1561_s1 = inlined_call_operand.vmem [shape: f32[27,128], index: 1, kind: input, shape index: {}]   ;;  %s1562_s2 = inlined_call_operand.vmem [shape: f32[1,128], index: 2, kind: input, shape index: {}]   ;;  %s1563_s3 = inlined_call_operand.vmem [shape: f32[2,14,128], index: 3, kind: output, shape index: {}]  }
   0x1   :  { %14 = vst [vmem:[#allocation2] sm:$0xff] %v937_v0  ;;  %v23_v1 = vld [vmem:[%s1560_s0] sm:$0xff]  ;;  %15 = vst [vmem:[#allocation2 + $0x8] sm:$0xff] %v937_v0  ;;  %v24_v2 = vld [vmem:[%s1560_s0 + $0x8] sm:$0xff]  ;;  %s941_s13 = smov 127   ;;  %s942_s19 = smov 126  }
   0x2   :  { %26 = vst.msk [vmem:[#allocation2] sm:$0xff] %vm25_vm0, %v23_v1  ;;  %27 = vst.msk [vmem:[#allocation2 + $0x8] sm:$0xff] %vm25_vm0, %v24_v2  ;;  %v874_v3 = vld [vmem:[%s1560_s0 + $0x10] sm:$0xff]  ;;  %v875_v4 = vld [vmem:[%s1560_s0 + $0x18] sm:$0xff] }
   0x3   :  { %v885_v7 = vld [vmem:[%s1560_s0 + $0x20] sm:$0xff]  ;;  %v886_v8 = vld [vmem:[%s1560_s0 + $0x28] sm:$0xff]  ;;  %v896_v11 = vld [vmem:[%s1560_s0 + $0x30] sm:$0xff] }
   0x4   :  { %v897_v12 = vld [vmem:[%s1560_s0 + $0x38] sm:$0xff]  ;;  %v907_v15 = vld [vmem:[%s1560_s0 + $0x40] sm:$0xff]  ;;  %v908_v16 = vld [vmem:[%s1560_s0 + $0x48] sm:$0xff] }
   0x5   :  { %v918_v19 = vld [vmem:[%s1560_s0 + $0x50] sm:$0xff]  ;;  %v919_v20 = vld [vmem:[%s1560_s0 + $0x58] sm:$0xff]  ;;  %s939_s0 = smov 32  }
   0x9   :  { %v28_v5 = vld [vmem:[#allocation2] sm:$0xff]  ;;  %v29_v6 = vld [vmem:[#allocation2 + $0x8] sm:$0xff] }
   0xa   :  { %30 = vrot.lane.b32.xlu0 %v28_v5, %s938_s20  ;;  %168 = vst.msk [vmem:[#allocation2] sm:$0xff] %vm25_vm0, %v874_v3  ;;  %169 = vst.msk [vmem:[#allocation2 + $0x8] sm:$0xff] %vm25_vm0, %v875_v4 }
   0xe   :  { %32 = vrot.lane.b32.xlu0 %v29_v6, %s938_s20 }
  0x11   :  { %v170_v9 = vld [vmem:[#allocation2] sm:$0xff]  ;;  %v171_v10 = vld [vmem:[#allocation2 + $0x8] sm:$0xff] }
  0x12   :  { %306 = vst.msk [vmem:[#allocation2] sm:$0xff] %vm25_vm0, %v885_v7  ;;  %172 = vrot.lane.b32.xlu0 %v170_v9, %s938_s20  ;;  %307 = vst.msk [vmem:[#allocation2 + $0x8] sm:$0xff] %vm25_vm0, %v886_v8 }
  0x19   :  { %v308_v13 = vld [vmem:[#allocation2] sm:$0xff]  ;;  %v309_v14 = vld [vmem:[#allocation2 + $0x8] sm:$0xff] }
  0x1a   :  { %446 = vst.msk [vmem:[#allocation2] sm:$0xff] %vm25_vm0, %v896_v11  ;;  %447 = vst.msk [vmem:[#allocation2 + $0x8] sm:$0xff] %vm25_vm0, %v897_v12 }
  0x21   :  { %v448_v17 = vld [vmem:[#allocation2] sm:$0xff]  ;;  %v449_v18 = vld [vmem:[#allocation2 + $0x8] sm:$0xff] }
  0x22   :  { %450 = vrot.lane.b32.xlu1 %v448_v17, %s938_s20  ;;  %584 = vst.msk [vmem:[#allocation2] sm:$0xff] %vm25_vm0, %v907_v15  ;;  %585 = vst.msk [vmem:[#allocation2 + $0x8] sm:$0xff] %vm25_vm0, %v908_v16 }
  0x26   :  { %452 = vrot.lane.b32.xlu1 %v449_v18, %s938_s20 }
  0x29   :  { %v586_v21 = vld [vmem:[#allocation2] sm:$0xff]  ;;  %v587_v22 = vld [vmem:[#allocation2 + $0x8] sm:$0xff] }
  0x2a   :  { %174 = vrot.lane.b32.xlu1 %v171_v10, %s938_s20  ;;  %588 = vrot.lane.b32.xlu0 %v586_v21, %s938_s20  ;;  %722 = vst.msk [vmem:[#allocation2] sm:$0xff] %vm25_vm0, %v918_v19  ;;  %723 = vst.msk [vmem:[#allocation2 + $0x8] sm:$0xff] %vm25_vm0, %v919_v20 }
  0x2e   :  { %590 = vrot.lane.b32.xlu1 %v587_v22, %s938_s20  ;;  %310 = vrot.lane.b32.xlu0 %v308_v13, %s938_s20 }
  0x31   :  { %v724_v23 = vld [vmem:[#allocation2] sm:$0xff]  ;;  %v725_v24 = vld [vmem:[#allocation2 + $0x8] sm:$0xff] }
  0x32   :  { %312 = vrot.lane.b32.xlu1 %v309_v14, %s938_s20  ;;  %726 = vrot.lane.b32.xlu0 %v724_v23, %s938_s20 }
  0x36   :  { %728 = vrot.lane.b32.xlu1 %v725_v24, %s938_s20 }
  0x7c   :  { %v31_v25 = vpop.permute.xlu0 %30 }
  0x7d   :  { %v34_v26 = vadd.f32 %v31_v25, %v28_v5 }
  0x7f   :  { %36 = vrot.lane.b32.xlu0 %v34_v26, %s939_s0 }
  0x80   :  { %v33_v27 = vpop.permute.xlu0 %32 }
  0x81   :  { %v35_v28 = vadd.f32 %v33_v27, %v29_v6 }
  0x83   :  { %38 = vrot.lane.b32.xlu1 %v35_v28, %s939_s0 }
  0x84   :  { %v173_v30 = vpop.permute.xlu0 %172 }
  0x85   :  { %v176_v32 = vadd.f32 %v173_v30, %v170_v9  ;;  %v59_v9 = vlaneseq }
  0x87   :  { %v1077_v12 = vshrl.u32 %v59_v9, 7 }
  0x89   :  { %vm61_vm1 = vcmp.lt.s32.totalorder %v1077_v12, 7  ;;  %vm75_vm2 = vcmp.lt.s32.totalorder %v1077_v12, 6 }
  0x94   :  { %v451_v29 = vpop.permute.xlu1 %450 }
  0x95   :  { %v454_v31 = vadd.f32 %v451_v29, %v448_v17 }
  0x97   :  { %456 = vrot.lane.b32.xlu0 %v454_v31, %s939_s0 }
  0x98   :  { %v453_v33 = vpop.permute.xlu1 %452 }
  0x99   :  { %v455_v34 = vadd.f32 %v453_v33, %v449_v18  ;;  %v864_v18 = vld [vmem:[%s1562_s2] ss:$0 sm:$0xff] }
  0x9b   :  { %458 = vrot.lane.b32.xlu1 %v455_v34, %s939_s0  ;;  %178 = vrot.lane.b32.xlu0 %v176_v32, %s939_s0 }
  0x9c   :  { %v175_v35 = vpop.permute.xlu1 %174  ;;  %v589_v36 = vpop.permute.xlu0 %588 }
  0x9d   :  { %v177_v37 = vadd.f32 %v175_v35, %v171_v10  ;;  %v592_v38 = vadd.f32 %v589_v36, %v586_v21 }
  0x9f   :  { %180 = vrot.lane.b32.xlu1 %v177_v37, %s939_s0  ;;  %594 = vrot.lane.b32.xlu0 %v592_v38, %s939_s0 }
  0xa0   :  { %v591_v39 = vpop.permute.xlu1 %590  ;;  %v311_v40 = vpop.permute.xlu0 %310 }
  0xa1   :  { %v593_v41 = vadd.f32 %v591_v39, %v587_v22  ;;  %v314_v42 = vadd.f32 %v311_v40, %v308_v13  ;;  %v865_v13 = vld [vmem:[%s1561_s1] ss:$0 sm:$0xff] }
  0xa3   :  { %596 = vrot.lane.b32.xlu1 %v593_v41, %s939_s0  ;;  %316 = vrot.lane.b32.xlu0 %v314_v42, %s939_s0 }
  0xa4   :  { %v313_v43 = vpop.permute.xlu1 %312  ;;  %v727_v44 = vpop.permute.xlu0 %726 }
  0xa5   :  { %v315_v45 = vadd.f32 %v313_v43, %v309_v14  ;;  %v730_v46 = vadd.f32 %v727_v44, %v724_v23  ;;  %v866_v23 = vld [vmem:[%s1561_s1 + $0x3] ss:$0 sm:$0xff] }
  0xa7   :  { %318 = vrot.lane.b32.xlu1 %v315_v45, %s939_s0  ;;  %732 = vrot.lane.b32.xlu0 %v730_v46, %s939_s0 }
  0xa8   :  { %v729_v47 = vpop.permute.xlu1 %728 }
  0xa9   :  { %v731_v48 = vadd.f32 %v729_v47, %v725_v24 }
  0xab   :  { %734 = vrot.lane.b32.xlu1 %v731_v48, %s939_s0 }
  0xf1   :  { %v37_v49 = vpop.permute.xlu0 %36 }
  0xf2   :  { %v40_v50 = vadd.f32 %v37_v49, %v34_v26  ;;  %v867_v26 = vld [vmem:[%s1561_s1 + $0x6] ss:$0 sm:$0xff] }
  0xf4   :  { %42 = vrot.lane.b32.xlu0 %v40_v50, %s940_s10 }
  0xf5   :  { %v39_v51 = vpop.permute.xlu1 %38 }
  0xf6   :  { %v41_v52 = vadd.f32 %v39_v51, %v35_v28 }
  0xf8   :  { %44 = vrot.lane.b32.xlu1 %v41_v52, %s940_s10 }
 0x109   :  { %v457_v53 = vpop.permute.xlu0 %456 }
 0x10a   :  { %v1037_v54 = vadd.f32 %v457_v53, %v454_v31 }
 0x10c   :  { %462 = vrot.lane.b32.xlu0 %v1037_v54, %s940_s10 }
 0x10d   :  { %v459_v55 = vpop.permute.xlu1 %458  ;;  %v179_v56 = vpop.permute.xlu0 %178 }
 0x10e   :  { %v1041_v57 = vadd.f32 %v459_v55, %v455_v34  ;;  %v1043_v58 = vadd.f32 %v179_v56, %v176_v32 }
 0x110   :  { %464 = vrot.lane.b32.xlu1 %v1041_v57, %s940_s10  ;;  %184 = vrot.lane.b32.xlu0 %v1043_v58, %s940_s10 }
 0x111   :  { %v181_v59 = vpop.permute.xlu1 %180  ;;  %v595_v60 = vpop.permute.xlu0 %594 }
 0x112   :  { %v1049_v61 = vadd.f32 %v181_v59, %v177_v37  ;;  %v1051_v62 = vadd.f32 %v595_v60, %v592_v38 }
 0x114   :  { %186 = vrot.lane.b32.xlu1 %v1049_v61, %s940_s10  ;;  %600 = vrot.lane.b32.xlu0 %v1051_v62, %s940_s10 }
 0x115   :  { %v597_v63 = vpop.permute.xlu1 %596  ;;  %v317_v0 = vpop.permute.xlu0 %316 }
 0x116   :  { %v1057_v1 = vadd.f32 %v597_v63, %v593_v41  ;;  %v1059_v2 = vadd.f32 %v317_v0, %v314_v42 }
 0x118   :  { %602 = vrot.lane.b32.xlu1 %v1057_v1, %s940_s10  ;;  %322 = vrot.lane.b32.xlu0 %v1059_v2, %s940_s10 }
 0x119   :  { %v319_v3 = vpop.permute.xlu1 %318  ;;  %v733_v4 = vpop.permute.xlu0 %732 }
 0x11a   :  { %v1065_v5 = vadd.f32 %v319_v3, %v315_v45  ;;  %v1067_v6 = vadd.f32 %v733_v4, %v730_v46 }
 0x11c   :  { %324 = vrot.lane.b32.xlu1 %v1065_v5, %s940_s10  ;;  %738 = vrot.lane.b32.xlu0 %v1067_v6, %s940_s10 }
 0x11d   :  { %v735_v7 = vpop.permute.xlu1 %734 }
 0x11e   :  { %v1073_v8 = vadd.f32 %v735_v7, %v731_v48 }
 0x120   :  { %740 = vrot.lane.b32.xlu1 %v1073_v8, %s940_s10 }
 0x166   :  { %v43_v10 = vpop.permute.xlu0 %42 }
 0x167   :  { %v46_v11 = vadd.f32 %v43_v10, %v40_v50 }
 0x169   :  { %87 = vrot.lane.b32.xlu0 %v46_v11, %s941_s13  ;;  %v53_v16 = vmul.f32 %v865_v13, %v46_v11  ;;  %v57_v17 = vrot.slane %v46_v11, 1  ;;  %v73_v19 = vrot.slane %v46_v11, 2 }
 0x16a   :  { %v45_v14 = vpop.permute.xlu1 %44 }
 0x16b   :  { %v47_v15 = vadd.f32 %v45_v14, %v41_v52  ;;  %v55_v29 = vadd.f32 %v864_v18, %v53_v16 }
 0x16d   :  { %v54_v20 = vmul.f32 %v865_v13, %v47_v15  ;;  %v58_v21 = vrot.slane %v47_v15, 1  ;;  %v74_v22 = vrot.slane %v47_v15, 2  ;;  %89 = vrot.lane.b32.xlu1 %v47_v15, %s941_s13 }
 0x16f   :  { %v62_v24 = vsel %vm61_vm1, %v57_v17, %v58_v21  ;;  %v76_v25 = vsel %vm75_vm2, %v73_v19, %v74_v22  ;;  %v56_v27 = vadd.f32 %v864_v18, %v54_v20  ;;  %v63_v28 = vsel %vm61_vm1, %v58_v21, %v57_v17 }
 0x170   :  { %v69_v30 = vmul.f32 %v866_v23, %v62_v24  ;;  %v70_v31 = vmul.f32 %v866_v23, %v63_v28  ;;  %v77_v32 = vsel %vm75_vm2, %v74_v22, %v73_v19  ;;  %v83_v34 = vmul.f32 %v867_v26, %v76_v25 }
 0x171   :  { %v84_v36 = vmul.f32 %v867_v26, %v77_v32 }
 0x172   :  { %v71_v33 = vadd.f32 %v69_v30, %v55_v29  ;;  %v72_v35 = vadd.f32 %v70_v31, %v56_v27 }
 0x174   :  { %v1103_v37 = vadd.f32 %v83_v34, %v71_v33  ;;  %v1105_v38 = vadd.f32 %v84_v36, %v72_v35 }
 0x17e   :  { %v463_v39 = vpop.permute.xlu0 %462 }
 0x17f   :  { %v466_v40 = vadd.f32 %v463_v39, %v1037_v54 }
 0x181   :  { %503 = vrot.lane.b32.xlu0 %v466_v40, %s941_s13  ;;  %v473_v44 = vmul.f32 %v865_v13, %v466_v40  ;;  %v477_v45 = vrot.slane %v466_v40, 1  ;;  %v490_v46 = vrot.slane %v466_v40, 2 }
 0x182   :  { %v465_v41 = vpop.permute.xlu1 %464  ;;  %v185_v42 = vpop.permute.xlu0 %184 }
 0x183   :  { %v467_v43 = vadd.f32 %v465_v41, %v1041_v57  ;;  %v1111_v50 = vadd.f32 %v185_v42, %v1043_v58  ;;  %v475_v56 = vadd.f32 %v864_v18, %v473_v44 }
 0x185   :  { %v474_v47 = vmul.f32 %v865_v13, %v467_v43  ;;  %v478_v48 = vrot.slane %v467_v43, 1  ;;  %v491_v49 = vrot.slane %v467_v43, 2  ;;  %505 = vrot.lane.b32.xlu1 %v467_v43, %s941_s13  ;;  %126 = vrot.lane.b32.xlu0 %v46_v11, %s942_s19  ;;  %v199_v60 = vrot.slane %v1111_v50, 1 }
 0x186   :  { %v187_v51 = vpop.permute.xlu1 %186  ;;  %v601_v52 = vpop.permute.xlu0 %600  ;;  %v212_v14 = vrot.slane %v1111_v50, 2 }
 0x187   :  { %v1116_v53 = vadd.f32 %v187_v51, %v1049_v61  ;;  %v479_v54 = vsel %vm61_vm1, %v477_v45, %v478_v48  ;;  %v492_v55 = vsel %vm75_vm2, %v490_v46, %v491_v49  ;;  %v476_v58 = vadd.f32 %v864_v18, %v474_v47 }
 0x188   :  { %v486_v57 = vmul.f32 %v866_v23, %v479_v54  ;;  %v480_v59 = vsel %vm61_vm1, %v478_v48, %v477_v45  ;;  %v1127_v0 = vadd.f32 %v601_v52, %v1051_v62  ;;  %v499_v9 = vmul.f32 %v867_v26, %v492_v55  ;;  %v868_v55 = vld [vmem:[%s1561_s1 + $0x1] ss:$0 sm:$0xff] }
 0x189   :  { %v200_v63 = vrot.slane %v1116_v53, 1  ;;  %128 = vrot.lane.b32.xlu1 %v47_v15, %s942_s19  ;;  %542 = vrot.lane.b32.xlu0 %v466_v40, %s942_s19  ;;  %v213_v61 = vrot.slane %v1116_v53, 2  ;;  %v487_v10 = vmul.f32 %v866_v23, %v480_v59  ;;  %v493_v13 = vsel %vm75_vm2, %v491_v49, %v490_v46 }
 0x18a   :  { %v603_v3 = vpop.permute.xlu1 %602  ;;  %v323_v4 = vpop.permute.xlu0 %322  ;;  %v488_v7 = vadd.f32 %v486_v57, %v475_v56  ;;  %v500_v17 = vmul.f32 %v867_v26, %v493_v13  ;;  %v615_v18 = vrot.slane %v1127_v0, 1  ;;  %v628_v20 = vrot.slane %v1127_v0, 2  ;;  %v876_v57 = vld [vmem:[%s1561_s1 + $0x9] ss:$0 sm:$0xff] }
 0x18b   :  { %v1133_v11 = vadd.f32 %v603_v3, %v1057_v1  ;;  %v1139_v62 = vsel %vm61_vm1, %v199_v60, %v200_v63  ;;  %v489_v16 = vadd.f32 %v487_v10, %v476_v58  ;;  %v1152_v21 = vadd.f32 %v323_v4, %v1059_v2  ;;  %v1272_v58 = vld [vmem:[%s1561_s1 + $0x4] ss:$0 sm:$0xff]  ;;  %v878_v4 = vld [vmem:[%s1561_s1 + $0xf] ss:$0 sm:$0xff] }
 0x18c   :  { %v1142_v15 = vadd.f32 %v499_v9, %v488_v7  ;;  %v1158_v25 = vsel %vm75_vm2, %v212_v14, %v213_v61  ;;  %v1165_v27 = vsel %vm61_vm1, %v200_v63, %v199_v60  ;;  %v1169_v28 = vsel %vm75_vm2, %v213_v61, %v212_v14  ;;  %v877_v60 = vld [vmem:[%s1561_s1 + $0xc] ss:$0 sm:$0xff]  ;;  %v887_v63 = vld [vmem:[%s1561_s1 + $0x12] ss:$0 sm:$0xff] }
 0x18d   :  { %v616_v19 = vrot.slane %v1133_v11, 1  ;;  %v629_v1 = vrot.slane %v1133_v11, 2  ;;  %544 = vrot.lane.b32.xlu1 %v467_v43, %s942_s19  ;;  %225 = vrot.lane.b32.xlu0 %v1111_v50, %s941_s13  ;;  %v1154_v24 = vadd.f32 %v500_v17, %v489_v16  ;;  %v337_v32 = vrot.slane %v1152_v21, 1 }
 0x18e   :  { %v325_v22 = vpop.permute.xlu1 %324  ;;  %v739_v23 = vpop.permute.xlu0 %738  ;;  %v350_v33 = vrot.slane %v1152_v21, 2  ;;  %v1286_v7 = vmul.f32 %v876_v57, %v1111_v50  ;;  %v1289_v9 = vmul.f32 %v876_v57, %v1116_v53  ;;  %v1294_v14 = vmul.f32 %v876_v57, %v1127_v0 }
 0x18f   :  { %v1161_v26 = vadd.f32 %v325_v22, %v1065_v5  ;;  %v1173_v2 = vsel %vm61_vm1, %v615_v18, %v616_v19  ;;  %v1177_v29 = vsel %vm75_vm2, %v628_v20, %v629_v1  ;;  %v1182_v31 = vadd.f32 %v739_v23, %v1067_v6  ;;  %v889_v22 = vld [vmem:[%s1561_s1 + $0x18] ss:$0 sm:$0xff] }
 0x190   :  { %v1195_v36 = vsel %vm61_vm1, %v616_v19, %v615_v18  ;;  %v1199_v6 = vsel %vm75_vm2, %v629_v1, %v628_v20  ;;  %v1297_v16 = vmul.f32 %v876_v57, %v1133_v11  ;;  %v1301_v18 = vmul.f32 %v877_v60, %v1139_v62 }
 0x191   :  { %v338_v30 = vrot.slane %v1161_v26, 1  ;;  %v351_v5 = vrot.slane %v1161_v26, 2  ;;  %227 = vrot.lane.b32.xlu1 %v1116_v53, %s941_s13  ;;  %641 = vrot.lane.b32.xlu0 %v1127_v0, %s941_s13  ;;  %v753_v41 = vrot.slane %v1182_v31, 1  ;;  %v1307_v19 = vmul.f32 %v878_v4, %v1158_v25  ;;  %v870_v25 = vld [vmem:[%s1561_s1 + $0x7] ss:$0 sm:$0xff] }
 0x192   :  { %v741_v34 = vpop.permute.xlu1 %740  ;;  %v1310_v1 = vmul.f32 %v877_v60, %v1165_v27  ;;  %v1325_v23 = vmul.f32 %v887_v63, %v1182_v31 }
 0x193   :  { %v1191_v35 = vadd.f32 %v741_v34, %v1073_v8  ;;  %v1203_v39 = vsel %vm61_vm1, %v337_v32, %v338_v30  ;;  %v1207_v40 = vsel %vm75_vm2, %v350_v33, %v351_v5  ;;  %v766_v8 = vrot.slane %v1182_v31, 2 }
 0x194   :  { %v1219_v44 = vsel %vm61_vm1, %v338_v30, %v337_v32  ;;  %v1223_v45 = vsel %vm75_vm2, %v351_v5, %v350_v33  ;;  %v1339_v5 = vmul.f32 %v878_v4, %v1177_v29  ;;  %v1345_v32 = vmul.f32 %v878_v4, %v1199_v6 }
 0x195   :  { %v754_v42 = vrot.slane %v1191_v35, 1  ;;  %v767_v43 = vrot.slane %v1191_v35, 2  ;;  %643 = vrot.lane.b32.xlu1 %v1133_v11, %s941_s13  ;;  %264 = vrot.lane.b32.xlu0 %v1111_v50, %s942_s19  ;;  %v1304_v50 = vmul.f32 %v887_v63, %v1152_v21  ;;  %v1348_v33 = vmul.f32 %v887_v63, %v1191_v35 }
 0x196   :  { %v1356_v34 = vmul.f32 %v889_v22, %v1207_v40  ;;  %v1365_v6 = vmul.f32 %v889_v22, %v1223_v45 }
 0x197   :  { %v1227_v46 = vsel %vm61_vm1, %v753_v41, %v754_v42  ;;  %v1231_v47 = vsel %vm75_vm2, %v766_v8, %v767_v43  ;;  %v1235_v48 = vsel %vm61_vm1, %v754_v42, %v753_v41  ;;  %v1239_v49 = vsel %vm75_vm2, %v767_v43, %v766_v8 }
 0x199   :  { %266 = vrot.lane.b32.xlu1 %v1116_v53, %s942_s19  ;;  %680 = vrot.lane.b32.xlu0 %v1127_v0, %s942_s19  ;;  %v1313_v0 = vmul.f32 %v887_v63, %v1161_v26 }
 0x19d   :  { %682 = vrot.lane.b32.xlu1 %v1133_v11, %s942_s19  ;;  %363 = vrot.lane.b32.xlu0 %v1152_v21, %s941_s13 }
 0x1a1   :  { %365 = vrot.lane.b32.xlu1 %v1161_v26, %s941_s13  ;;  %779 = vrot.lane.b32.xlu0 %v1182_v31, %s941_s13 }
 0x1a5   :  { %781 = vrot.lane.b32.xlu1 %v1191_v35, %s941_s13  ;;  %402 = vrot.lane.b32.xlu0 %v1152_v21, %s942_s19  ;;  %v888_v21 = vld [vmem:[%s1561_s1 + $0x15] ss:$0 sm:$0xff] }
 0x1a6   :  { %v1368_v42 = vmul.f32 %v888_v21, %v1227_v46  ;;  %v1374_v40 = vmul.f32 %v888_v21, %v1235_v48 }
 0x1a9   :  { %404 = vrot.lane.b32.xlu1 %v1161_v26, %s942_s19  ;;  %818 = vrot.lane.b32.xlu0 %v1182_v31, %s942_s19  ;;  %v1336_v26 = vmul.f32 %v877_v60, %v1173_v2  ;;  %v1342_v31 = vmul.f32 %v877_v60, %v1195_v36  ;;  %v1353_v2 = vmul.f32 %v888_v21, %v1203_v39 }
 0x1aa   :  { %v1359_v36 = vmul.f32 %v888_v21, %v1219_v44  ;;  %v1371_v39 = vmul.f32 %v889_v22, %v1231_v47 }
 0x1ad   :  { %820 = vrot.lane.b32.xlu1 %v1191_v35, %s942_s19  ;;  %v871_v35 = vld [vmem:[%s1561_s1 + $0x2] ss:$0 sm:$0xff] }
 0x1db   :  { %v88_v52 = vpop.permute.xlu0 %87 }
 0x1dc   :  { %v100_v56 = vrot.slane %v88_v52, 1  ;;  %v96_v61 = vmul.f32 %v868_v55, %v88_v52  ;;  %v113_v53 = vrot.slane %v88_v52, 2 }
 0x1de   :  { %v98_v11 = vadd.f32 %v96_v61, %v1103_v37 }
 0x1df   :  { %v90_v51 = vpop.permute.xlu1 %89 }
 0x1e0   :  { %v101_v54 = vrot.slane %v90_v51, 1  ;;  %v97_v3 = vmul.f32 %v868_v55, %v90_v51  ;;  %v114_v13 = vrot.slane %v90_v51, 2 }
 0x1e2   :  { %v102_v59 = vsel %vm61_vm1, %v100_v56, %v101_v54  ;;  %v103_v10 = vsel %vm61_vm1, %v101_v54, %v100_v56  ;;  %v99_v20 = vadd.f32 %v97_v3, %v1105_v38  ;;  %v115_v37 = vsel %vm75_vm2, %v113_v53, %v114_v13 }
 0x1e3   :  { %v109_v17 = vmul.f32 %v1272_v58, %v102_v59  ;;  %v110_v62 = vmul.f32 %v1272_v58, %v103_v10  ;;  %v1333_v38 = vmul.f32 %v878_v4, %v1169_v28  ;;  %v116_v28 = vsel %vm75_vm2, %v114_v13, %v113_v53 }
 0x1e4   :  { %v122_v41 = vmul.f32 %v870_v25, %v115_v37  ;;  %v123_v43 = vmul.f32 %v870_v25, %v116_v28  ;;  %v1377_v56 = vmul.f32 %v889_v22, %v1239_v49 }
 0x1e5   :  { %v111_v30 = vadd.f32 %v109_v17, %v98_v11  ;;  %v112_v29 = vadd.f32 %v110_v62, %v99_v20  ;;  %v872_v20 = vld [vmem:[%s1561_s1 + $0x5] ss:$0 sm:$0xff] }
 0x1e7   :  { %v124_v52 = vadd.f32 %v122_v41, %v111_v30  ;;  %v125_v61 = vadd.f32 %v123_v43, %v112_v29 }
 0x1f3   :  { %v504_v27 = vpop.permute.xlu0 %503 }
 0x1f4   :  { %v512_v8 = vmul.f32 %v868_v55, %v504_v27  ;;  %v516_v51 = vrot.slane %v504_v27, 1  ;;  %v529_v57 = vrot.slane %v504_v27, 2 }
 0x1f6   :  { %v514_v46 = vadd.f32 %v512_v8, %v1142_v15 }
 0x1f7   :  { %v506_v44 = vpop.permute.xlu1 %505  ;;  %v127_v54 = vpop.permute.xlu0 %126 }
 0x1f8   :  { %v513_v45 = vmul.f32 %v868_v55, %v506_v44  ;;  %v517_v59 = vrot.slane %v506_v44, 1  ;;  %v530_v60 = vrot.slane %v506_v44, 2  ;;  %v135_v63 = vmul.f32 %v871_v35, %v127_v54 }
 0x1f9   :  { %v139_v47 = vrot.slane %v127_v54, 1  ;;  %v152_v13 = vrot.slane %v127_v54, 2 }
 0x1fa   :  { %v515_v48 = vadd.f32 %v513_v45, %v1154_v24  ;;  %v518_v3 = vsel %vm61_vm1, %v516_v51, %v517_v59  ;;  %v519_v4 = vsel %vm61_vm1, %v517_v59, %v516_v51  ;;  %v531_v49 = vsel %vm75_vm2, %v529_v57, %v530_v60 }
 0x1fb   :  { %v525_v55 = vmul.f32 %v1272_v58, %v518_v3  ;;  %v526_v10 = vmul.f32 %v1272_v58, %v519_v4  ;;  %v532_v15 = vsel %vm75_vm2, %v530_v60, %v529_v57  ;;  %v129_v17 = vpop.permute.xlu1 %128  ;;  %v543_v53 = vpop.permute.xlu0 %542  ;;  %v538_v24 = vmul.f32 %v870_v25, %v531_v49  ;;  %v873_v58 = vld [vmem:[%s1561_s1 + $0x8] ss:$0 sm:$0xff] }
 0x1fc   :  { %v539_v11 = vmul.f32 %v870_v25, %v532_v15  ;;  %v136_v62 = vmul.f32 %v871_v35, %v129_v17  ;;  %v140_v21 = vrot.slane %v129_v17, 1  ;;  %v137_v37 = vadd.f32 %v135_v63, %v124_v52 }
 0x1fd   :  { %v528_v22 = vadd.f32 %v526_v10, %v515_v48  ;;  %v153_v27 = vrot.slane %v129_v17, 2  ;;  %v527_v30 = vadd.f32 %v525_v55, %v514_v46  ;;  %v551_v41 = vmul.f32 %v871_v35, %v543_v53  ;;  %v879_v46 = vld [vmem:[%s1561_s1 + $0xa] ss:$0 sm:$0xff] }
 0x1fe   :  { %v138_v28 = vadd.f32 %v136_v62, %v125_v61  ;;  %v141_v29 = vsel %vm61_vm1, %v139_v47, %v140_v21  ;;  %v142_v25 = vsel %vm61_vm1, %v140_v21, %v139_v47  ;;  %v555_v60 = vrot.slane %v543_v53, 1 }
 0x1ff   :  { %v148_v8 = vmul.f32 %v872_v20, %v141_v29  ;;  %v149_v43 = vmul.f32 %v872_v20, %v142_v25  ;;  %v154_v51 = vsel %vm75_vm2, %v152_v13, %v153_v27  ;;  %v155_v44 = vsel %vm75_vm2, %v153_v27, %v152_v13  ;;  %v545_v52 = vpop.permute.xlu1 %544  ;;  %v226_v54 = vpop.permute.xlu0 %225 }
 0x200   :  { %v161_v57 = vmul.f32 %v873_v58, %v154_v51  ;;  %v162_v45 = vmul.f32 %v873_v58, %v155_v44  ;;  %v540_v59 = vadd.f32 %v538_v24, %v527_v30  ;;  %v541_v61 = vadd.f32 %v539_v11, %v528_v22  ;;  %v880_v51 = vld [vmem:[%s1561_s1 + $0xd] ss:$0 sm:$0xff] }
 0x201   :  { %v150_v63 = vadd.f32 %v148_v8, %v137_v37  ;;  %v151_v47 = vadd.f32 %v149_v43, %v138_v28  ;;  %v552_v48 = vmul.f32 %v871_v35, %v545_v52  ;;  %v568_v4 = vrot.slane %v543_v53, 2 }
 0x202   :  { %v553_v3 = vadd.f32 %v551_v41, %v540_v59  ;;  %v556_v49 = vrot.slane %v545_v52, 1  ;;  %v569_v55 = vrot.slane %v545_v52, 2  ;;  %v234_v17 = vmul.f32 %v879_v46, %v226_v54 }
 0x203   :  { %v163_v10 = vadd.f32 %v161_v57, %v150_v63  ;;  %v164_v15 = vadd.f32 %v162_v45, %v151_v47  ;;  %v554_v13 = vadd.f32 %v552_v48, %v541_v61  ;;  %v228_v62 = vpop.permute.xlu1 %227  ;;  %v642_v53 = vpop.permute.xlu0 %641  ;;  %v238_v30 = vrot.slane %v226_v54, 1 }
 0x204   :  { %v557_v24 = vsel %vm61_vm1, %v555_v60, %v556_v49  ;;  %v558_v21 = vsel %vm61_vm1, %v556_v49, %v555_v60  ;;  %v570_v37 = vsel %vm75_vm2, %v568_v4, %v569_v55  ;;  %v571_v35 = vsel %vm75_vm2, %v569_v55, %v568_v4 }
 0x205   :  { %v564_v11 = vmul.f32 %v872_v20, %v557_v24  ;;  %v565_v22 = vmul.f32 %v872_v20, %v558_v21  ;;  %v577_v27 = vmul.f32 %v873_v58, %v570_v37  ;;  %v578_v28 = vmul.f32 %v873_v58, %v571_v35  ;;  %v882_v37 = vld [vmem:[%s1561_s1 + $0xb] ss:$0 sm:$0xff] }
 0x206   :  { %v197_v29 = vadd.f32 %v1286_v7, %v163_v10  ;;  %v251_v25 = vrot.slane %v226_v54, 2  ;;  %v198_v41 = vadd.f32 %v1289_v9, %v164_v15  ;;  %v239_v44 = vrot.slane %v228_v62, 1  ;;  %v881_v9 = vld [vmem:[%s1561_s1 + $0x10] ss:$0 sm:$0xff] }
 0x207   :  { %v566_v8 = vadd.f32 %v564_v11, %v553_v3  ;;  %v567_v43 = vadd.f32 %v565_v22, %v554_v13  ;;  %v252_v52 = vrot.slane %v228_v62, 2  ;;  %v235_v45 = vmul.f32 %v879_v46, %v228_v62  ;;  %v644_v58 = vpop.permute.xlu1 %643  ;;  %v265_v48 = vpop.permute.xlu0 %264 }
 0x208   :  { %v210_v57 = vadd.f32 %v1301_v18, %v197_v29  ;;  %v211_v20 = vadd.f32 %v1310_v1, %v198_v41  ;;  %v650_v59 = vmul.f32 %v879_v46, %v642_v53  ;;  %v240_v54 = vsel %vm61_vm1, %v238_v30, %v239_v44 }
 0x209   :  { %v579_v60 = vadd.f32 %v577_v27, %v566_v8  ;;  %v580_v7 = vadd.f32 %v578_v28, %v567_v43  ;;  %v241_v63 = vsel %vm61_vm1, %v239_v44, %v238_v30  ;;  %v247_v1 = vmul.f32 %v880_v51, %v240_v54 }
 0x20a   :  { %v223_v47 = vadd.f32 %v1307_v19, %v210_v57  ;;  %v224_v18 = vadd.f32 %v1333_v38, %v211_v20  ;;  %v654_v61 = vrot.slane %v642_v53, 1  ;;  %v248_v3 = vmul.f32 %v880_v51, %v241_v63 }
 0x20b   :  { %v253_v4 = vsel %vm75_vm2, %v251_v25, %v252_v52  ;;  %v254_v49 = vsel %vm75_vm2, %v252_v52, %v251_v25  ;;  %v613_v55 = vadd.f32 %v1294_v14, %v579_v60  ;;  %v667_v62 = vrot.slane %v642_v53, 2  ;;  %v267_v30 = vpop.permute.xlu1 %266  ;;  %v681_v25 = vpop.permute.xlu0 %680 }
 0x20c   :  { %v236_v10 = vadd.f32 %v234_v17, %v223_v47  ;;  %v237_v15 = vadd.f32 %v235_v45, %v224_v18  ;;  %v260_v13 = vmul.f32 %v881_v9, %v253_v4  ;;  %v261_v24 = vmul.f32 %v881_v9, %v254_v49  ;;  %v883_v45 = vld [vmem:[%s1561_s1 + $0xe] ss:$0 sm:$0xff] }
 0x20d   :  { %v626_v19 = vadd.f32 %v1336_v26, %v613_v55  ;;  %v614_v38 = vadd.f32 %v1297_v16, %v580_v7  ;;  %v655_v21 = vrot.slane %v644_v58, 1  ;;  %v651_v11 = vmul.f32 %v879_v46, %v644_v58 }
 0x20e   :  { %v250_v35 = vadd.f32 %v248_v3, %v237_v15  ;;  %v668_v22 = vrot.slane %v644_v58, 2  ;;  %v249_v27 = vadd.f32 %v247_v1, %v236_v10  ;;  %v273_v29 = vmul.f32 %v882_v37, %v265_v48 }
 0x20f   :  { %v639_v14 = vadd.f32 %v1339_v5, %v626_v19  ;;  %v627_v17 = vadd.f32 %v1342_v31, %v614_v38  ;;  %v656_v53 = vsel %vm61_vm1, %v654_v61, %v655_v21  ;;  %v657_v16 = vsel %vm61_vm1, %v655_v21, %v654_v61  ;;  %v364_v55 = vpop.permute.xlu0 %363 }
 0x210   :  { %v663_v26 = vmul.f32 %v880_v51, %v656_v53  ;;  %v669_v28 = vsel %vm75_vm2, %v667_v62, %v668_v22  ;;  %v670_v46 = vsel %vm75_vm2, %v668_v22, %v667_v62  ;;  %v664_v8 = vmul.f32 %v880_v51, %v657_v16 }
 0x211   :  { %v652_v41 = vadd.f32 %v650_v59, %v639_v14  ;;  %v640_v5 = vadd.f32 %v1345_v32, %v627_v17  ;;  %v676_v31 = vmul.f32 %v881_v9, %v669_v28  ;;  %v677_v43 = vmul.f32 %v881_v9, %v670_v46  ;;  %v884_v32 = vld [vmem:[%s1561_s1 + $0x11] ss:$0 sm:$0xff]  ;;  %v683_v9 = vpop.permute.xlu1 %682 }
 0x212   :  { %v262_v44 = vadd.f32 %v260_v13, %v249_v27  ;;  %v277_v52 = vrot.slane %v265_v48, 1  ;;  %v263_v57 = vadd.f32 %v261_v24, %v250_v35  ;;  %v274_v58 = vmul.f32 %v882_v37, %v267_v30  ;;  %v890_v24 = vld [vmem:[%s1561_s1 + $0x13] ss:$0 sm:$0xff] }
 0x213   :  { %v653_v20 = vadd.f32 %v651_v11, %v640_v5  ;;  %v278_v60 = vrot.slane %v267_v30, 1  ;;  %v291_v7 = vrot.slane %v267_v30, 2  ;;  %v290_v63 = vrot.slane %v265_v48, 2 }
 0x214   :  { %v275_v54 = vadd.f32 %v273_v29, %v262_v44  ;;  %v665_v51 = vadd.f32 %v663_v26, %v652_v41  ;;  %v689_v59 = vmul.f32 %v882_v37, %v681_v25  ;;  %v276_v18 = vadd.f32 %v274_v58, %v263_v57 }
 0x215   :  { %v666_v47 = vadd.f32 %v664_v8, %v653_v20  ;;  %v279_v1 = vsel %vm61_vm1, %v277_v52, %v278_v60  ;;  %v280_v61 = vsel %vm61_vm1, %v278_v60, %v277_v52  ;;  %v292_v48 = vsel %vm75_vm2, %v290_v63, %v291_v7  ;;  %v366_v26 = vpop.permute.xlu1 %365  ;;  %v891_v60 = vld [vmem:[%s1561_s1 + $0x16] ss:$0 sm:$0xff] }
 0x216   :  { %v286_v3 = vmul.f32 %v883_v45, %v279_v1  ;;  %v287_v4 = vmul.f32 %v883_v45, %v280_v61  ;;  %v293_v49 = vsel %vm75_vm2, %v291_v7, %v290_v63  ;;  %v299_v10 = vmul.f32 %v884_v32, %v292_v48 }
 0x217   :  { %v300_v15 = vmul.f32 %v884_v32, %v293_v49  ;;  %v678_v13 = vadd.f32 %v676_v31, %v665_v51  ;;  %v693_v62 = vrot.slane %v681_v25, 1  ;;  %v679_v21 = vadd.f32 %v677_v43, %v666_v47  ;;  %v1478_v31 = vpop.permute.xlu0 %779 }
 0x218   :  { %v288_v19 = vadd.f32 %v286_v3, %v275_v54  ;;  %v289_v38 = vadd.f32 %v287_v4, %v276_v18  ;;  %v690_v35 = vmul.f32 %v882_v37, %v683_v9  ;;  %v706_v22 = vrot.slane %v681_v25, 2 }
 0x219   :  { %v691_v11 = vadd.f32 %v689_v59, %v678_v13  ;;  %v694_v27 = vrot.slane %v683_v9, 1  ;;  %v707_v30 = vrot.slane %v683_v9, 2  ;;  %v372_v16 = vmul.f32 %v890_v24, %v364_v55  ;;  %v782_v18 = vpop.permute.xlu1 %781 }
 0x21a   :  { %v301_v14 = vadd.f32 %v299_v10, %v288_v19  ;;  %v302_v17 = vadd.f32 %v300_v15, %v289_v38  ;;  %v692_v53 = vadd.f32 %v690_v35, %v679_v21  ;;  %v376_v8 = vrot.slane %v364_v55, 1  ;;  %v893_v38 = vld [vmem:[%s1561_s1 + $0x14] ss:$0 sm:$0xff] }
 0x21b   :  { %v695_v28 = vsel %vm61_vm1, %v693_v62, %v694_v27  ;;  %v696_v46 = vsel %vm61_vm1, %v694_v27, %v693_v62  ;;  %v708_v29 = vsel %vm75_vm2, %v706_v22, %v707_v30  ;;  %v709_v37 = vsel %vm75_vm2, %v707_v30, %v706_v22  ;;  %v403_v21 = vpop.permute.xlu0 %402 }
 0x21c   :  { %v702_v25 = vmul.f32 %v883_v45, %v695_v28  ;;  %v703_v41 = vmul.f32 %v883_v45, %v696_v46  ;;  %v715_v5 = vmul.f32 %v884_v32, %v708_v29  ;;  %v716_v43 = vmul.f32 %v884_v32, %v709_v37 }
 0x21d   :  { %v335_v44 = vadd.f32 %v1304_v50, %v301_v14  ;;  %v389_v52 = vrot.slane %v364_v55, 2  ;;  %v336_v57 = vadd.f32 %v1313_v0, %v302_v17  ;;  %v377_v7 = vrot.slane %v366_v26, 1  ;;  %v1491_v0 = vld [vmem:[%s1561_s1 + $0x19] ss:$0 sm:$0xff] }
 0x21e   :  { %v704_v20 = vadd.f32 %v702_v25, %v691_v11  ;;  %v705_v58 = vadd.f32 %v703_v41, %v692_v53  ;;  %v390_v54 = vrot.slane %v366_v26, 2  ;;  %v373_v51 = vmul.f32 %v890_v24, %v366_v26 }
 0x21f   :  { %v348_v45 = vadd.f32 %v1353_v2, %v335_v44  ;;  %v349_v63 = vadd.f32 %v1359_v36, %v336_v57  ;;  %v788_v32 = vmul.f32 %v890_v24, %v1478_v31  ;;  %v378_v9 = vsel %vm61_vm1, %v376_v8, %v377_v7  ;;  %v895_v44 = vld [vmem:[%s1561_s1 + $0x1a] ss:$0 sm:$0xff] }
 0x220   :  { %v717_v59 = vadd.f32 %v715_v5, %v704_v20  ;;  %v718_v50 = vadd.f32 %v716_v43, %v705_v58  ;;  %v379_v47 = vsel %vm61_vm1, %v377_v7, %v376_v8  ;;  %v385_v1 = vmul.f32 %v891_v60, %v378_v9 }
 0x221   :  { %v361_v2 = vadd.f32 %v1356_v34, %v348_v45  ;;  %v362_v36 = vadd.f32 %v1365_v6, %v349_v63  ;;  %v792_v61 = vrot.slane %v1478_v31, 1  ;;  %v386_v3 = vmul.f32 %v891_v60, %v379_v47  ;;  %v819_v45 = vpop.permute.xlu0 %818 }
 0x222   :  { %v391_v4 = vsel %vm75_vm2, %v389_v52, %v390_v54  ;;  %v392_v48 = vsel %vm75_vm2, %v390_v54, %v389_v52  ;;  %v751_v49 = vadd.f32 %v1325_v23, %v717_v59  ;;  %v805_v34 = vrot.slane %v1478_v31, 2 }
 0x223   :  { %v374_v55 = vadd.f32 %v372_v16, %v361_v2  ;;  %v375_v10 = vadd.f32 %v373_v51, %v362_v36  ;;  %v398_v15 = vmul.f32 %v1491_v0, %v391_v4  ;;  %v399_v6 = vmul.f32 %v1491_v0, %v392_v48 }
 0x224   :  { %v764_v13 = vadd.f32 %v1368_v42, %v751_v49  ;;  %v752_v62 = vadd.f32 %v1348_v33, %v718_v50  ;;  %v793_v19 = vrot.slane %v782_v18, 1  ;;  %v789_v23 = vmul.f32 %v890_v24, %v782_v18  ;;  %v405_v42 = vpop.permute.xlu1 %404 }
 0x225   :  { %v388_v35 = vadd.f32 %v386_v3, %v375_v10  ;;  %v806_v11 = vrot.slane %v782_v18, 2  ;;  %v387_v22 = vadd.f32 %v385_v1, %v374_v55  ;;  %v411_v26 = vmul.f32 %v893_v38, %v403_v21 }
 0x226   :  { %v777_v27 = vadd.f32 %v1371_v39, %v764_v13  ;;  %v765_v30 = vadd.f32 %v1374_v40, %v752_v62  ;;  %v794_v14 = vsel %vm61_vm1, %v792_v61, %v793_v19  ;;  %v795_v33 = vsel %vm61_vm1, %v793_v19, %v792_v61  ;;  %v894_v40 = vld [vmem:[%s1561_s1 + $0x17] ss:$0 sm:$0xff] }
 0x227   :  { %v801_v17 = vmul.f32 %v891_v60, %v794_v14  ;;  %v802_v53 = vmul.f32 %v891_v60, %v795_v33  ;;  %v807_v16 = vsel %vm75_vm2, %v805_v34, %v806_v11  ;;  %v400_v46 = vadd.f32 %v398_v15, %v387_v22 }
 0x228   :  { %v790_v24 = vadd.f32 %v788_v32, %v777_v27  ;;  %v778_v28 = vadd.f32 %v1377_v56, %v765_v30  ;;  %v415_v39 = vrot.slane %v403_v21, 1  ;;  %v428_v29 = vrot.slane %v403_v21, 2  ;;  %v821_v59 = vpop.permute.xlu1 %820 }
 0x229   :  { %v401_v37 = vadd.f32 %v399_v6, %v388_v35  ;;  %v412_v25 = vmul.f32 %v893_v38, %v405_v42  ;;  %v416_v41 = vrot.slane %v405_v42, 1  ;;  %v413_v8 = vadd.f32 %v411_v26, %v400_v46 }
 0x22a   :  { %v791_v5 = vadd.f32 %v789_v23, %v778_v28  ;;  %v429_v31 = vrot.slane %v405_v42, 2  ;;  %v803_v43 = vadd.f32 %v801_v17, %v790_v24  ;;  %v814_v20 = vmul.f32 %v1491_v0, %v807_v16 }
 0x22b   :  { %v414_v52 = vadd.f32 %v412_v25, %v401_v37  ;;  %v417_v56 = vsel %vm61_vm1, %v415_v39, %v416_v41  ;;  %v418_v57 = vsel %vm61_vm1, %v416_v41, %v415_v39  ;;  %v808_v58 = vsel %vm75_vm2, %v806_v11, %v805_v34 }
 0x22c   :  { %v424_v60 = vmul.f32 %v894_v40, %v417_v56  ;;  %v425_v7 = vmul.f32 %v894_v40, %v418_v57  ;;  %v430_v54 = vsel %vm75_vm2, %v428_v29, %v429_v31  ;;  %v804_v63 = vadd.f32 %v802_v53, %v791_v5 }
 0x22d   :  { %v431_v51 = vsel %vm75_vm2, %v429_v31, %v428_v29  ;;  %v816_v32 = vadd.f32 %v814_v20, %v803_v43  ;;  %v437_v47 = vmul.f32 %v895_v44, %v430_v54  ;;  %v827_v2 = vmul.f32 %v893_v38, %v819_v45 }
 0x22e   :  { %v426_v50 = vadd.f32 %v424_v60, %v413_v8  ;;  %v427_v9 = vadd.f32 %v425_v7, %v414_v52  ;;  %v438_v18 = vmul.f32 %v895_v44, %v431_v51  ;;  %v831_v36 = vrot.slane %v819_v45, 1 }
 0x22f   :  { %v844_v1 = vrot.slane %v819_v45, 2  ;;  %v815_v61 = vmul.f32 %v1491_v0, %v808_v58  ;;  %v832_v48 = vrot.slane %v821_v59, 1  ;;  %v845_v49 = vrot.slane %v821_v59, 2 }
 0x230   :  { %v439_v3 = vadd.f32 %v437_v47, %v426_v50  ;;  %v440_v4 = vadd.f32 %v438_v18, %v427_v9  ;;  %v829_v55 = vadd.f32 %v827_v2, %v816_v32  ;;  %v828_v15 = vmul.f32 %v893_v38, %v821_v59 }
 0x231   :  { %v817_v10 = vadd.f32 %v815_v61, %v804_v63  ;;  %v833_v34 = vsel %vm61_vm1, %v831_v36, %v832_v48  ;;  %v834_v0 = vsel %vm61_vm1, %v832_v48, %v831_v36  ;;  %v846_v6 = vsel %vm75_vm2, %v844_v1, %v845_v49 }
 0x232   :  { %441 = vst [vmem:[%s1563_s3] sm:$0xff] %v439_v3  ;;  %442 = vst [vmem:[%s1563_s3 + $0x8] sm:$0x3f] %v440_v4  ;;  %v847_v13 = vsel %vm75_vm2, %v845_v49, %v844_v1  ;;  %v840_v19 = vmul.f32 %v894_v40, %v833_v34  ;;  %v841_v38 = vmul.f32 %v894_v40, %v834_v0 }
 0x233   :  { %v830_v62 = vadd.f32 %v828_v15, %v817_v10  ;;  %v853_v23 = vmul.f32 %v895_v44, %v846_v6  ;;  %v854_v11 = vmul.f32 %v895_v44, %v847_v13 }
 0x234   :  { %v842_v21 = vadd.f32 %v840_v19, %v829_v55 }
 0x235   :  { %v843_v35 = vadd.f32 %v841_v38, %v830_v62 }
 0x236   :  { %v855_v22 = vadd.f32 %v853_v23, %v842_v21 }
 0x237   :  { %v856_v27 = vadd.f32 %v854_v11, %v843_v35 }
 0x238   :  { %929 = vst [vmem:[%s1563_s3 + $0x10] sm:$0xff] %v855_v22 }
 0x239   :  { %930 = vst [vmem:[%s1563_s3 + $0x18] sm:$0x3f] %v856_v27 }

</bundles_post_ra>
